<compile_context>
chip_gen: v5e
topology: v5e:2x2
jax: 0.10.0
libtpu: 0.0.40
codegen_flags: <defaults>
</compile_context>

<pallas_src>
import functools
import math

import jax
import jax.numpy as jnp
from jax.experimental import pallas as pl
from jax.experimental.pallas import tpu as pltpu

EPS = 1e-6  # custom LayerNorm eps (annotated-transformer style)


# ----------------------------------------------------------------------------
# Fused EncoderLayer kernel
# ----------------------------------------------------------------------------
def _ln(x, a, b):
    """Custom LayerNorm: a * (x - mean) / (std_unbiased + eps) + b."""
    d = x.shape[-1]
    mean = jnp.mean(x, axis=-1, keepdims=True)
    diff = x - mean
    var = jnp.sum(diff * diff, axis=-1, keepdims=True) / (d - 1)
    return a * diff / (jnp.sqrt(var) + EPS) + b


def encoder_layer_kernel(xq_ref, xkv_ref, mask_ref, vec_ref,
                         wattn_ref, w1_ref, b1_ref, w2_ref,
                         out_ref, k_scr, v_scr, *, nheads):
    D = xq_ref.shape[-1]
    dk = D // nheads

    # packed per-feature vectors: [ln1_a, ln1_b, ln2_a, ln2_b, bq, bk, bv, bo, b2]
    vec = vec_ref[...]                       # (9, D) f32
    ln1_a, ln1_b = vec[0:1, :], vec[1:2, :]
    ln2_a, ln2_b = vec[2:3, :], vec[3:4, :]
    bq, bk = vec[4:5, :], vec[5:6, :]
    bv, bo = vec[6:7, :], vec[7:8, :]
    b2 = vec[8:9, :]

    # ---- K / V over the full sequence: compute once per batch element ------
    @pl.when(pl.program_id(1) == 0)
    def _():
        h_kv = _ln(xkv_ref[0], ln1_a, ln1_b).astype(jnp.bfloat16)   # (S, D)
        k = jnp.dot(h_kv, wattn_ref[:, D:2 * D],
                    preferred_element_type=jnp.float32) + bk
        v = jnp.dot(h_kv, wattn_ref[:, 2 * D:3 * D],
                    preferred_element_type=jnp.float32) + bv
        k_scr[...] = k.astype(jnp.bfloat16)
        v_scr[...] = v.astype(jnp.bfloat16)

    # ---- sublayer 0: multi-head self-attention ------------------------------
    x = xq_ref[0]                                                   # (TQ, D) f32
    h = _ln(x, ln1_a, ln1_b)
    q = jnp.dot(h.astype(jnp.bfloat16), wattn_ref[:, 0:D],
                preferred_element_type=jnp.float32) + bq
    q = q * jnp.float32(1.0 / math.sqrt(dk))

    kf = k_scr[...]                                                 # (S, D) bf16
    vf = v_scr[...]                                                 # (S, D) bf16
    mask_row = mask_ref[0]                                          # (1, S) f32
    neg = jnp.float32(-1e9)

    ctx_parts = []
    for hh in range(nheads):                                        # static loop
        lo = hh * dk
        qh = q[:, lo:lo + dk].astype(jnp.bfloat16)                  # (TQ, dk)
        kh = kf[:, lo:lo + dk]                                      # (S, dk)
        vh = vf[:, lo:lo + dk]                                      # (S, dk)
        scores = jax.lax.dot_general(qh, kh, (((1,), (1,)), ((), ())),
                                     preferred_element_type=jnp.float32)
        scores = jnp.where(mask_row > 0.0, scores, neg)             # (TQ, S)
        m = jnp.max(scores, axis=-1, keepdims=True)
        e = jnp.exp(scores - m)
        p = e * pl.reciprocal(jnp.sum(e, axis=-1, keepdims=True), approx=True)
        ctx_parts.append(jnp.dot(p.astype(jnp.bfloat16), vh,
                                 preferred_element_type=jnp.float32))
    ctx = jnp.concatenate(ctx_parts, axis=-1)                       # (TQ, D) f32

    attn_out = jnp.dot(ctx.astype(jnp.bfloat16), wattn_ref[:, 3 * D:4 * D],
                       preferred_element_type=jnp.float32) + bo
    x1 = x + attn_out                                               # residual 1

    # ---- sublayer 1: position-wise feed forward ------------------------------
    h2 = _ln(x1, ln2_a, ln2_b)
    t = jnp.dot(h2.astype(jnp.bfloat16), w1_ref[...],
                preferred_element_type=jnp.float32) + b1_ref[...]
    t = jnp.maximum(t, 0.0)
    ff = jnp.dot(t.astype(jnp.bfloat16), w2_ref[...],
                 preferred_element_type=jnp.float32) + b2

    out_ref[0] = x1 + ff                                            # residual 2


# ----------------------------------------------------------------------------
# Wrapper
# ----------------------------------------------------------------------------
def _pick_tq(T):
    if T <= 128:
        return T
    for tq in (128, 64, 32, 16, 8):
        if T % tq == 0:
            return tq
    return T


def _vmem_limit_bytes(T, TQ, D, Dff):
    f32, bf16 = 4, 2
    blocks = (2 * TQ * D * f32          # x_q in + out
              + T * D * f32             # x_kv
              + T * f32                 # mask
              + 9 * D * f32 + Dff * f32
              + (4 * D * D + 2 * D * Dff) * bf16)
    scratch = 2 * T * D * bf16
    live = (TQ * Dff + 4 * TQ * D + TQ * T) * f32
    est = 2 * blocks + scratch + live   # double-buffered pipeline
    return int(min(110 * 2 ** 20, max(32 * 2 ** 20, 2 * est)))


def encoder_layer_pallas(x, mask, params, nheads):
    B, T, D = x.shape
    Dff = params["w1"].shape[1]
    assert D % nheads == 0
    TQ = _pick_tq(T)
    assert T % TQ == 0
    nq = T // TQ

    vec = jnp.stack([params["ln1_a"], params["ln1_b"],
                     params["ln2_a"], params["ln2_b"],
                     params["bq"], params["bk"], params["bv"], params["bo"],
                     params["b2"]], axis=0).astype(jnp.float32)       # (9, D)
    w_attn = jnp.concatenate([params["wq"], params["wk"],
                              params["wv"], params["wo"]],
                             axis=1).astype(jnp.bfloat16)             # (D, 4D)
    w1 = params["w1"].astype(jnp.bfloat16)                            # (D, Dff)
    w2 = params["w2"].astype(jnp.bfloat16)                            # (Dff, D)
    b1 = params["b1"].reshape(1, Dff).astype(jnp.float32)
    mask_f = mask.astype(jnp.float32).reshape(B, 1, T)

    grid_spec = pltpu.PrefetchScalarGridSpec(
        num_scalar_prefetch=0,
        grid=(B, nq),
        in_specs=[
            pl.BlockSpec((1, TQ, D), lambda b, i: (b, i, 0)),   # x (query rows)
            pl.BlockSpec((1, T, D), lambda b, i: (b, 0, 0)),    # x (full seq, KV)
            pl.BlockSpec((1, 1, T), lambda b, i: (b, 0, 0)),    # mask
            pl.BlockSpec((9, D), lambda b, i: (0, 0)),          # packed vectors
            pl.BlockSpec((D, 4 * D), lambda b, i: (0, 0)),      # [Wq|Wk|Wv|Wo]
            pl.BlockSpec((D, Dff), lambda b, i: (0, 0)),        # W1
            pl.BlockSpec((1, Dff), lambda b, i: (0, 0)),        # b1
            pl.BlockSpec((Dff, D), lambda b, i: (0, 0)),        # W2
        ],
        out_specs=pl.BlockSpec((1, TQ, D), lambda b, i: (b, i, 0)),
        scratch_shapes=[
            pltpu.VMEM((T, D), jnp.bfloat16),    # cached K
            pltpu.VMEM((T, D), jnp.bfloat16),    # cached V
        ],
    )

    return pl.pallas_call(
        functools.partial(encoder_layer_kernel, nheads=nheads),
        out_shape=jax.ShapeDtypeStruct((B, T, D), jnp.float32),
        grid_spec=grid_spec,
        compiler_params=pltpu.CompilerParams(
            dimension_semantics=("parallel", "arbitrary"),
            vmem_limit_bytes=_vmem_limit_bytes(T, TQ, D, Dff)),
    )(x, x, mask_f, vec, w_attn, w1, b1, w2)


# ----------------------------------------------------------------------------
# Pure-JAX f32 reference (PyTorch semantics) for the correctness check
# ----------------------------------------------------------------------------
def encoder_layer_ref(x, mask, params, nheads):
    B, T, D = x.shape
    dk = D // nheads

    def ln(y, a, b):
        mean = jnp.mean(y, -1, keepdims=True)
        diff = y - mean
        var = jnp.sum(diff * diff, -1, keepdims=True) / (D - 1)
        return a * diff / (jnp.sqrt(var) + EPS) + b

    h = ln(x, params["ln1_a"], params["ln1_b"])
    q = h @ params["wq"] + params["bq"]
    k = h @ params["wk"] + params["bk"]
    v = h @ params["wv"] + params["bv"]
    qh = q.reshape(B, T, nheads, dk).transpose(0, 2, 1, 3)
    kh = k.reshape(B, T, nheads, dk).transpose(0, 2, 1, 3)
    vh = v.reshape(B, T, nheads, dk).transpose(0, 2, 1, 3)
    scores = jnp.einsum("bhtd,bhsd->bhts", qh, kh) / math.sqrt(dk)
    scores = jnp.where(mask[:, None, :, :] > 0, scores, -1e9)
    p = jax.nn.softmax(scores, axis=-1)
    ctx = jnp.einsum("bhts,bhsd->bhtd", p, vh).transpose(0, 2, 1, 3).reshape(B, T, D)
    x1 = x + ctx @ params["wo"] + params["bo"]
    h2 = ln(x1, params["ln2_a"], params["ln2_b"])
    ff = jnp.maximum(h2 @ params["w1"] + params["b1"], 0.0) @ params["w2"] + params["b2"]
    return x1 + ff


# ----------------------------------------------------------------------------
# Deterministic parameter init
# ----------------------------------------------------------------------------
def init_params(key, D, Dff):
    def w(k, shape):
        return jax.random.normal(k, shape, jnp.float32) * 0.05

    ks = jax.random.split(key, 16)
    return {
        "ln1_a": 1.0 + 0.02 * jax.random.normal(ks[12], (D,), jnp.float32),
        "ln1_b": 0.02 * jax.random.normal(ks[13], (D,), jnp.float32),
        "ln2_a": 1.0 + 0.02 * jax.random.normal(ks[14], (D,), jnp.float32),
        "ln2_b": 0.02 * jax.random.normal(ks[15], (D,), jnp.float32),
        "wq": w(ks[0], (D, D)), "bq": w(ks[1], (D,)),
        "wk": w(ks[2], (D, D)), "bk": w(ks[3], (D,)),
        "wv": w(ks[4], (D, D)), "bv": w(ks[5], (D,)),
        "wo": w(ks[6], (D, D)), "bo": w(ks[7], (D,)),
        "w1": w(ks[8], (D, Dff)), "b1": w(ks[9], (Dff,)),
        "w2": w(ks[10], (Dff, D)), "b2": w(ks[11], (D,)),
    }


# ----------------------------------------------------------------------------
if __name__ == "__main__":
    B, T, D, H = 2, 16, 128, 4
    Dff = 2 * D

    key = jax.random.PRNGKey(0)
    kx, kp = jax.random.split(key, 2)

    x = jax.random.normal(kx, (B, T, D), jnp.float32)
    # source-padding style mask: batch 1 has its last 3 positions masked out
    mask = jnp.ones((B, 1, T), jnp.float32).at[1, 0, T - 3:].set(0.0)

    params = init_params(kp, D, Dff)

    fwd = jax.jit(lambda xx: encoder_layer_pallas(xx, mask, params, H))
    out = jax.block_until_ready(fwd(x))
    assert out.shape == (B, T, D)

    ref = encoder_layer_ref(x, mask, params, H)
    assert jnp.allclose(out, ref, atol=3e-2, rtol=3e-2), "mismatch vs reference"

    print("KERNEL_OK")
</pallas_src>

<mosaic_0001>
module attributes {stable_mosaic.version = 11 : i64} {
  func.func @encoder_layer_kernel(%arg0: i32, %arg1: i32, %arg2: memref<1x16x128xf32, #tpu.memory_space<vmem>>, %arg3: memref<1x16x128xf32, #tpu.memory_space<vmem>>, %arg4: memref<1x1x16xf32, #tpu.memory_space<vmem>>, %arg5: memref<9x128xf32, #tpu.memory_space<vmem>>, %arg6: memref<128x512xbf16, #tpu.memory_space<vmem>>, %arg7: memref<128x256xbf16, #tpu.memory_space<vmem>>, %arg8: memref<1x256xf32, #tpu.memory_space<vmem>>, %arg9: memref<256x128xbf16, #tpu.memory_space<vmem>>, %arg10: memref<1x16x128xf32, #tpu.memory_space<vmem>>, %arg11: memref<16x128xbf16, #tpu.memory_space<vmem>>, %arg12: memref<16x128xbf16, #tpu.memory_space<vmem>>) attributes {dimension_semantics = [#tpu.dimension_semantics<parallel>, #tpu.dimension_semantics<arbitrary>], iteration_bounds = array<i64: 2, 1>, scalar_prefetch = 0 : i64, scratch_operands = 2 : i64, tpu.core_type = #tpu.core_type<tc>, window_params = [{transform_indices = @transform_0, window_bounds = array<i64: 1, 16, 128>}, {transform_indices = @transform_1, window_bounds = array<i64: 1, 16, 128>}, {transform_indices = @transform_2, window_bounds = array<i64: 1, 1, 16>}, {pipeline_mode = #tpu.pipeline_mode<synchronous>, transform_indices = @transform_3, window_bounds = array<i64: 9, 128>}, {pipeline_mode = #tpu.pipeline_mode<synchronous>, transform_indices = @transform_4, window_bounds = array<i64: 128, 512>}, {pipeline_mode = #tpu.pipeline_mode<synchronous>, transform_indices = @transform_5, window_bounds = array<i64: 128, 256>}, {pipeline_mode = #tpu.pipeline_mode<synchronous>, transform_indices = @transform_6, window_bounds = array<i64: 1, 256>}, {pipeline_mode = #tpu.pipeline_mode<synchronous>, transform_indices = @transform_7, window_bounds = array<i64: 256, 128>}, {transform_indices = @transform_8, window_bounds = array<i64: 1, 16, 128>}]} {
    %c0 = arith.constant 0 : index
    %c0_0 = arith.constant 0 : index
    %0 = vector.load %arg5[%c0, %c0_0] : memref<9x128xf32, #tpu.memory_space<vmem>>, vector<9x128xf32>
    %1 = vector.extract_strided_slice %0 {offsets = [0, 0], sizes = [1, 128], strides = [1, 1]} : vector<9x128xf32> to vector<1x128xf32>
    %2 = vector.extract_strided_slice %0 {offsets = [1, 0], sizes = [1, 128], strides = [1, 1]} : vector<9x128xf32> to vector<1x128xf32>
    %3 = vector.extract_strided_slice %0 {offsets = [2, 0], sizes = [1, 128], strides = [1, 1]} : vector<9x128xf32> to vector<1x128xf32>
    %4 = vector.extract_strided_slice %0 {offsets = [3, 0], sizes = [1, 128], strides = [1, 1]} : vector<9x128xf32> to vector<1x128xf32>
    %5 = vector.extract_strided_slice %0 {offsets = [4, 0], sizes = [1, 128], strides = [1, 1]} : vector<9x128xf32> to vector<1x128xf32>
    %6 = vector.extract_strided_slice %0 {offsets = [5, 0], sizes = [1, 128], strides = [1, 1]} : vector<9x128xf32> to vector<1x128xf32>
    %7 = vector.extract_strided_slice %0 {offsets = [6, 0], sizes = [1, 128], strides = [1, 1]} : vector<9x128xf32> to vector<1x128xf32>
    %8 = vector.extract_strided_slice %0 {offsets = [7, 0], sizes = [1, 128], strides = [1, 1]} : vector<9x128xf32> to vector<1x128xf32>
    %9 = vector.extract_strided_slice %0 {offsets = [8, 0], sizes = [1, 128], strides = [1, 1]} : vector<9x128xf32> to vector<1x128xf32>
    %c0_i32 = arith.constant 0 : i32
    %10 = arith.cmpi eq, %arg1, %c0_i32 : i32
    %11 = arith.extui %10 : i1 to i32
    %c0_i32_1 = arith.constant 0 : i32
    %12 = arith.cmpi ne, %11, %c0_i32_1 : i32
    scf.if %12 {
      %c0_63 = arith.constant 0 : index
      %c0_64 = arith.constant 0 : index
      %c0_65 = arith.constant 0 : index
      %182 = vector.load %arg3[%c0_63, %c0_64, %c0_65] : memref<1x16x128xf32, #tpu.memory_space<vmem>>, vector<1x16x128xf32>
      %183 = vector.shape_cast %182 : vector<1x16x128xf32> to vector<16x128xf32>
      %cst_66 = arith.constant dense<0.000000e+00> : vector<16xf32>
      %184 = vector.multi_reduction <add>, %183, %cst_66 [1] : vector<16x128xf32> to vector<16xf32>
      %185 = vector.shape_cast %184 : vector<16xf32> to vector<16x1xf32>
      %cst_67 = arith.constant 1.280000e+02 : f32
      %186 = vector.broadcast %cst_67 : f32 to vector<16x1xf32>
      %187 = arith.divf %185, %186 : vector<16x1xf32>
      %188 = vector.broadcast %187 : vector<16x1xf32> to vector<16x128xf32>
      %189 = arith.subf %183, %188 : vector<16x128xf32>
      %190 = arith.mulf %189, %189 : vector<16x128xf32>
      %cst_68 = arith.constant dense<0.000000e+00> : vector<16xf32>
      %191 = vector.multi_reduction <add>, %190, %cst_68 [1] : vector<16x128xf32> to vector<16xf32>
      %192 = vector.shape_cast %191 : vector<16xf32> to vector<16x1xf32>
      %cst_69 = arith.constant 1.270000e+02 : f32
      %193 = vector.broadcast %cst_69 : f32 to vector<16x1xf32>
      %194 = arith.divf %192, %193 : vector<16x1xf32>
      %195 = vector.broadcast %1 : vector<1x128xf32> to vector<16x128xf32>
      %196 = arith.mulf %195, %189 : vector<16x128xf32>
      %197 = math.sqrt %194 : vector<16x1xf32>
      %cst_70 = arith.constant 9.99999997E-7 : f32
      %198 = vector.broadcast %cst_70 : f32 to vector<16x1xf32>
      %199 = arith.addf %197, %198 : vector<16x1xf32>
      %200 = vector.broadcast %199 : vector<16x1xf32> to vector<16x128xf32>
      %201 = arith.divf %196, %200 : vector<16x128xf32>
      %202 = vector.broadcast %2 : vector<1x128xf32> to vector<16x128xf32>
      %203 = arith.addf %201, %202 : vector<16x128xf32>
      %204 = arith.truncf %203 : vector<16x128xf32> to vector<16x128xbf16>
      %c0_71 = arith.constant 0 : index
      %c128 = arith.constant 128 : index
      %205 = vector.load %arg6[%c0_71, %c128] : memref<128x512xbf16, #tpu.memory_space<vmem>>, vector<128x128xbf16>
      %cst_72 = arith.constant dense<0.000000e+00> : vector<16x128xf32>
      %206 = tpu.matmul %204, %205, %cst_72 {dimension_numbers = #tpu.dot_dimension_numbers<[1], [0], [0], [1], [0, 0, 1, 1], [], []>} : vector<16x128xbf16>, vector<128x128xbf16>, vector<16x128xf32> -> vector<16x128xf32>
      %207 = vector.broadcast %6 : vector<1x128xf32> to vector<16x128xf32>
      %208 = arith.addf %206, %207 : vector<16x128xf32>
      %c0_73 = arith.constant 0 : index
      %c256 = arith.constant 256 : index
      %209 = vector.load %arg6[%c0_73, %c256] : memref<128x512xbf16, #tpu.memory_space<vmem>>, vector<128x128xbf16>
      %cst_74 = arith.constant dense<0.000000e+00> : vector<16x128xf32>
      %210 = tpu.matmul %204, %209, %cst_74 {dimension_numbers = #tpu.dot_dimension_numbers<[1], [0], [0], [1], [0, 0, 1, 1], [], []>} : vector<16x128xbf16>, vector<128x128xbf16>, vector<16x128xf32> -> vector<16x128xf32>
      %211 = vector.broadcast %7 : vector<1x128xf32> to vector<16x128xf32>
      %212 = arith.addf %210, %211 : vector<16x128xf32>
      %213 = arith.truncf %208 : vector<16x128xf32> to vector<16x128xbf16>
      %c0_75 = arith.constant 0 : index
      %c0_76 = arith.constant 0 : index
      %214 = vector.load %arg11[%c0_75, %c0_76] : memref<16x128xbf16, #tpu.memory_space<vmem>>, vector<16x128xbf16>
      tpu.vector_store %arg11[%c0_75, %c0_76], %213 {strides = array<i32>} : memref<16x128xbf16, #tpu.memory_space<vmem>>, vector<16x128xbf16>,
      %215 = arith.truncf %212 : vector<16x128xf32> to vector<16x128xbf16>
      %c0_77 = arith.constant 0 : index
      %c0_78 = arith.constant 0 : index
      %216 = vector.load %arg12[%c0_77, %c0_78] : memref<16x128xbf16, #tpu.memory_space<vmem>>, vector<16x128xbf16>
      tpu.vector_store %arg12[%c0_77, %c0_78], %215 {strides = array<i32>} : memref<16x128xbf16, #tpu.memory_space<vmem>>, vector<16x128xbf16>,
    } else {
    }
    %c0_2 = arith.constant 0 : index
    %c0_3 = arith.constant 0 : index
    %c0_4 = arith.constant 0 : index
    %13 = vector.load %arg2[%c0_2, %c0_3, %c0_4] : memref<1x16x128xf32, #tpu.memory_space<vmem>>, vector<1x16x128xf32>
    %14 = vector.shape_cast %13 : vector<1x16x128xf32> to vector<16x128xf32>
    %cst = arith.constant dense<0.000000e+00> : vector<16xf32>
    %15 = vector.multi_reduction <add>, %14, %cst [1] : vector<16x128xf32> to vector<16xf32>
    %16 = vector.shape_cast %15 : vector<16xf32> to vector<16x1xf32>
    %cst_5 = arith.constant 1.280000e+02 : f32
    %17 = vector.broadcast %cst_5 : f32 to vector<16x1xf32>
    %18 = arith.divf %16, %17 : vector<16x1xf32>
    %19 = vector.broadcast %18 : vector<16x1xf32> to vector<16x128xf32>
    %20 = arith.subf %14, %19 : vector<16x128xf32>
    %21 = arith.mulf %20, %20 : vector<16x128xf32>
    %cst_6 = arith.constant dense<0.000000e+00> : vector<16xf32>
    %22 = vector.multi_reduction <add>, %21, %cst_6 [1] : vector<16x128xf32> to vector<16xf32>
    %23 = vector.shape_cast %22 : vector<16xf32> to vector<16x1xf32>
    %cst_7 = arith.constant 1.270000e+02 : f32
    %24 = vector.broadcast %cst_7 : f32 to vector<16x1xf32>
    %25 = arith.divf %23, %24 : vector<16x1xf32>
    %26 = vector.broadcast %1 : vector<1x128xf32> to vector<16x128xf32>
    %27 = arith.mulf %26, %20 : vector<16x128xf32>
    %28 = math.sqrt %25 : vector<16x1xf32>
    %cst_8 = arith.constant 9.99999997E-7 : f32
    %29 = vector.broadcast %cst_8 : f32 to vector<16x1xf32>
    %30 = arith.addf %28, %29 : vector<16x1xf32>
    %31 = vector.broadcast %30 : vector<16x1xf32> to vector<16x128xf32>
    %32 = arith.divf %27, %31 : vector<16x128xf32>
    %33 = vector.broadcast %2 : vector<1x128xf32> to vector<16x128xf32>
    %34 = arith.addf %32, %33 : vector<16x128xf32>
    %35 = arith.truncf %34 : vector<16x128xf32> to vector<16x128xbf16>
    %c0_9 = arith.constant 0 : index
    %c0_10 = arith.constant 0 : index
    %36 = vector.load %arg6[%c0_9, %c0_10] : memref<128x512xbf16, #tpu.memory_space<vmem>>, vector<128x128xbf16>
    %cst_11 = arith.constant dense<0.000000e+00> : vector<16x128xf32>
    %37 = tpu.matmul %35, %36, %cst_11 {dimension_numbers = #tpu.dot_dimension_numbers<[1], [0], [0], [1], [0, 0, 1, 1], [], []>} : vector<16x128xbf16>, vector<128x128xbf16>, vector<16x128xf32> -> vector<16x128xf32>
    %38 = vector.broadcast %5 : vector<1x128xf32> to vector<16x128xf32>
    %39 = arith.addf %37, %38 : vector<16x128xf32>
    %cst_12 = arith.constant 0.176776692 : f32
    %40 = vector.broadcast %cst_12 : f32 to vector<16x128xf32>
    %41 = arith.mulf %39, %40 : vector<16x128xf32>
    %c0_13 = arith.constant 0 : index
    %c0_14 = arith.constant 0 : index
    %42 = vector.load %arg11[%c0_13, %c0_14] : memref<16x128xbf16, #tpu.memory_space<vmem>>, vector<16x128xbf16>
    %c0_15 = arith.constant 0 : index
    %c0_16 = arith.constant 0 : index
    %43 = vector.load %arg12[%c0_15, %c0_16] : memref<16x128xbf16, #tpu.memory_space<vmem>>, vector<16x128xbf16>
    %c0_17 = arith.constant 0 : index
    %c0_18 = arith.constant 0 : index
    %c0_19 = arith.constant 0 : index
    %44 = vector.load %arg4[%c0_17, %c0_18, %c0_19] : memref<1x1x16xf32, #tpu.memory_space<vmem>>, vector<1x1x16xf32>
    %45 = vector.shape_cast %44 : vector<1x1x16xf32> to vector<1x16xf32>
    %46 = vector.extract_strided_slice %41 {offsets = [0, 0], sizes = [16, 32], strides = [1, 1]} : vector<16x128xf32> to vector<16x32xf32>
    %47 = arith.truncf %46 : vector<16x32xf32> to vector<16x32xbf16>
    %48 = vector.extract_strided_slice %42 {offsets = [0, 0], sizes = [16, 32], strides = [1, 1]} : vector<16x128xbf16> to vector<16x32xbf16>
    %49 = vector.extract_strided_slice %43 {offsets = [0, 0], sizes = [16, 32], strides = [1, 1]} : vector<16x128xbf16> to vector<16x32xbf16>
    %cst_20 = arith.constant dense<0.000000e+00> : vector<16x16xf32>
    %50 = tpu.matmul %47, %48, %cst_20 {dimension_numbers = #tpu.dot_dimension_numbers<[1], [1], [0], [0], [0, 0, 1, 0], [], []>} : vector<16x32xbf16>, vector<16x32xbf16>, vector<16x16xf32> -> vector<16x16xf32>
    %cst_21 = arith.constant 0.000000e+00 : f32
    %51 = vector.broadcast %cst_21 : f32 to vector<1x16xf32>
    %52 = arith.cmpf ogt, %45, %51 : vector<1x16xf32>
    %cst_22 = arith.constant -1.000000e+09 : f32
    %53 = vector.shape_cast %52 : vector<1x16xi1> to vector<1x16xi1>
    %54 = vector.broadcast %53 : vector<1x16xi1> to vector<16x16xi1>
    %55 = vector.broadcast %cst_22 : f32 to vector<16x16xf32>
    %56 = arith.select %54, %50, %55 : vector<16x16xi1>, vector<16x16xf32>
    %cst_23 = arith.constant dense<0xFF800000> : vector<16xf32>
    %57 = vector.multi_reduction <maximumf>, %56, %cst_23 [1] : vector<16x16xf32> to vector<16xf32>
    %58 = vector.shape_cast %57 : vector<16xf32> to vector<16x1xf32>
    %59 = vector.broadcast %58 : vector<16x1xf32> to vector<16x16xf32>
    %60 = arith.subf %56, %59 : vector<16x16xf32>
    %61 = math.exp %60 : vector<16x16xf32>
    %cst_24 = arith.constant dense<0.000000e+00> : vector<16xf32>
    %62 = vector.multi_reduction <add>, %61, %cst_24 [1] : vector<16x16xf32> to vector<16xf32>
    %63 = vector.shape_cast %62 : vector<16xf32> to vector<16x1xf32>
    %64 = tpu.reciprocal %63 {approx = true} : vector<16x1xf32> -> vector<16x1xf32>
    %65 = vector.broadcast %64 : vector<16x1xf32> to vector<16x16xf32>
    %66 = arith.mulf %61, %65 : vector<16x16xf32>
    %67 = arith.truncf %66 : vector<16x16xf32> to vector<16x16xbf16>
    %cst_25 = arith.constant dense<0.000000e+00> : vector<16x32xf32>
    %68 = tpu.matmul %67, %49, %cst_25 {dimension_numbers = #tpu.dot_dimension_numbers<[1], [0], [0], [1], [0, 0, 1, 1], [], []>} : vector<16x16xbf16>, vector<16x32xbf16>, vector<16x32xf32> -> vector<16x32xf32>
    %69 = vector.extract_strided_slice %41 {offsets = [0, 32], sizes = [16, 32], strides = [1, 1]} : vector<16x128xf32> to vector<16x32xf32>
    %70 = arith.truncf %69 : vector<16x32xf32> to vector<16x32xbf16>
    %71 = vector.extract_strided_slice %42 {offsets = [0, 32], sizes = [16, 32], strides = [1, 1]} : vector<16x128xbf16> to vector<16x32xbf16>
    %72 = vector.extract_strided_slice %43 {offsets = [0, 32], sizes = [16, 32], strides = [1, 1]} : vector<16x128xbf16> to vector<16x32xbf16>
    %cst_26 = arith.constant dense<0.000000e+00> : vector<16x16xf32>
    %73 = tpu.matmul %70, %71, %cst_26 {dimension_numbers = #tpu.dot_dimension_numbers<[1], [1], [0], [0], [0, 0, 1, 0], [], []>} : vector<16x32xbf16>, vector<16x32xbf16>, vector<16x16xf32> -> vector<16x16xf32>
    %cst_27 = arith.constant 0.000000e+00 : f32
    %74 = vector.broadcast %cst_27 : f32 to vector<1x16xf32>
    %75 = arith.cmpf ogt, %45, %74 : vector<1x16xf32>
    %cst_28 = arith.constant -1.000000e+09 : f32
    %76 = vector.shape_cast %75 : vector<1x16xi1> to vector<1x16xi1>
    %77 = vector.broadcast %76 : vector<1x16xi1> to vector<16x16xi1>
    %78 = vector.broadcast %cst_28 : f32 to vector<16x16xf32>
    %79 = arith.select %77, %73, %78 : vector<16x16xi1>, vector<16x16xf32>
    %cst_29 = arith.constant dense<0xFF800000> : vector<16xf32>
    %80 = vector.multi_reduction <maximumf>, %79, %cst_29 [1] : vector<16x16xf32> to vector<16xf32>
    %81 = vector.shape_cast %80 : vector<16xf32> to vector<16x1xf32>
    %82 = vector.broadcast %81 : vector<16x1xf32> to vector<16x16xf32>
    %83 = arith.subf %79, %82 : vector<16x16xf32>
    %84 = math.exp %83 : vector<16x16xf32>
    %cst_30 = arith.constant dense<0.000000e+00> : vector<16xf32>
    %85 = vector.multi_reduction <add>, %84, %cst_30 [1] : vector<16x16xf32> to vector<16xf32>
    %86 = vector.shape_cast %85 : vector<16xf32> to vector<16x1xf32>
    %87 = tpu.reciprocal %86 {approx = true} : vector<16x1xf32> -> vector<16x1xf32>
    %88 = vector.broadcast %87 : vector<16x1xf32> to vector<16x16xf32>
    %89 = arith.mulf %84, %88 : vector<16x16xf32>
    %90 = arith.truncf %89 : vector<16x16xf32> to vector<16x16xbf16>
    %cst_31 = arith.constant dense<0.000000e+00> : vector<16x32xf32>
    %91 = tpu.matmul %90, %72, %cst_31 {dimension_numbers = #tpu.dot_dimension_numbers<[1], [0], [0], [1], [0, 0, 1, 1], [], []>} : vector<16x16xbf16>, vector<16x32xbf16>, vector<16x32xf32> -> vector<16x32xf32>
    %92 = vector.extract_strided_slice %41 {offsets = [0, 64], sizes = [16, 32], strides = [1, 1]} : vector<16x128xf32> to vector<16x32xf32>
    %93 = arith.truncf %92 : vector<16x32xf32> to vector<16x32xbf16>
    %94 = vector.extract_strided_slice %42 {offsets = [0, 64], sizes = [16, 32], strides = [1, 1]} : vector<16x128xbf16> to vector<16x32xbf16>
    %95 = vector.extract_strided_slice %43 {offsets = [0, 64], sizes = [16, 32], strides = [1, 1]} : vector<16x128xbf16> to vector<16x32xbf16>
    %cst_32 = arith.constant dense<0.000000e+00> : vector<16x16xf32>
    %96 = tpu.matmul %93, %94, %cst_32 {dimension_numbers = #tpu.dot_dimension_numbers<[1], [1], [0], [0], [0, 0, 1, 0], [], []>} : vector<16x32xbf16>, vector<16x32xbf16>, vector<16x16xf32> -> vector<16x16xf32>
    %cst_33 = arith.constant 0.000000e+00 : f32
    %97 = vector.broadcast %cst_33 : f32 to vector<1x16xf32>
    %98 = arith.cmpf ogt, %45, %97 : vector<1x16xf32>
    %cst_34 = arith.constant -1.000000e+09 : f32
    %99 = vector.shape_cast %98 : vector<1x16xi1> to vector<1x16xi1>
    %100 = vector.broadcast %99 : vector<1x16xi1> to vector<16x16xi1>
    %101 = vector.broadcast %cst_34 : f32 to vector<16x16xf32>
    %102 = arith.select %100, %96, %101 : vector<16x16xi1>, vector<16x16xf32>
    %cst_35 = arith.constant dense<0xFF800000> : vector<16xf32>
    %103 = vector.multi_reduction <maximumf>, %102, %cst_35 [1] : vector<16x16xf32> to vector<16xf32>
    %104 = vector.shape_cast %103 : vector<16xf32> to vector<16x1xf32>
    %105 = vector.broadcast %104 : vector<16x1xf32> to vector<16x16xf32>
    %106 = arith.subf %102, %105 : vector<16x16xf32>
    %107 = math.exp %106 : vector<16x16xf32>
    %cst_36 = arith.constant dense<0.000000e+00> : vector<16xf32>
    %108 = vector.multi_reduction <add>, %107, %cst_36 [1] : vector<16x16xf32> to vector<16xf32>
    %109 = vector.shape_cast %108 : vector<16xf32> to vector<16x1xf32>
    %110 = tpu.reciprocal %109 {approx = true} : vector<16x1xf32> -> vector<16x1xf32>
    %111 = vector.broadcast %110 : vector<16x1xf32> to vector<16x16xf32>
    %112 = arith.mulf %107, %111 : vector<16x16xf32>
    %113 = arith.truncf %112 : vector<16x16xf32> to vector<16x16xbf16>
    %cst_37 = arith.constant dense<0.000000e+00> : vector<16x32xf32>
    %114 = tpu.matmul %113, %95, %cst_37 {dimension_numbers = #tpu.dot_dimension_numbers<[1], [0], [0], [1], [0, 0, 1, 1], [], []>} : vector<16x16xbf16>, vector<16x32xbf16>, vector<16x32xf32> -> vector<16x32xf32>
    %115 = vector.extract_strided_slice %41 {offsets = [0, 96], sizes = [16, 32], strides = [1, 1]} : vector<16x128xf32> to vector<16x32xf32>
    %116 = arith.truncf %115 : vector<16x32xf32> to vector<16x32xbf16>
    %117 = vector.extract_strided_slice %42 {offsets = [0, 96], sizes = [16, 32], strides = [1, 1]} : vector<16x128xbf16> to vector<16x32xbf16>
    %118 = vector.extract_strided_slice %43 {offsets = [0, 96], sizes = [16, 32], strides = [1, 1]} : vector<16x128xbf16> to vector<16x32xbf16>
    %cst_38 = arith.constant dense<0.000000e+00> : vector<16x16xf32>
    %119 = tpu.matmul %116, %117, %cst_38 {dimension_numbers = #tpu.dot_dimension_numbers<[1], [1], [0], [0], [0, 0, 1, 0], [], []>} : vector<16x32xbf16>, vector<16x32xbf16>, vector<16x16xf32> -> vector<16x16xf32>
    %cst_39 = arith.constant 0.000000e+00 : f32
    %120 = vector.broadcast %cst_39 : f32 to vector<1x16xf32>
    %121 = arith.cmpf ogt, %45, %120 : vector<1x16xf32>
    %cst_40 = arith.constant -1.000000e+09 : f32
    %122 = vector.shape_cast %121 : vector<1x16xi1> to vector<1x16xi1>
    %123 = vector.broadcast %122 : vector<1x16xi1> to vector<16x16xi1>
    %124 = vector.broadcast %cst_40 : f32 to vector<16x16xf32>
    %125 = arith.select %123, %119, %124 : vector<16x16xi1>, vector<16x16xf32>
    %cst_41 = arith.constant dense<0xFF800000> : vector<16xf32>
    %126 = vector.multi_reduction <maximumf>, %125, %cst_41 [1] : vector<16x16xf32> to vector<16xf32>
    %127 = vector.shape_cast %126 : vector<16xf32> to vector<16x1xf32>
    %128 = vector.broadcast %127 : vector<16x1xf32> to vector<16x16xf32>
    %129 = arith.subf %125, %128 : vector<16x16xf32>
    %130 = math.exp %129 : vector<16x16xf32>
    %cst_42 = arith.constant dense<0.000000e+00> : vector<16xf32>
    %131 = vector.multi_reduction <add>, %130, %cst_42 [1] : vector<16x16xf32> to vector<16xf32>
    %132 = vector.shape_cast %131 : vector<16xf32> to vector<16x1xf32>
    %133 = tpu.reciprocal %132 {approx = true} : vector<16x1xf32> -> vector<16x1xf32>
    %134 = vector.broadcast %133 : vector<16x1xf32> to vector<16x16xf32>
    %135 = arith.mulf %130, %134 : vector<16x16xf32>
    %136 = arith.truncf %135 : vector<16x16xf32> to vector<16x16xbf16>
    %cst_43 = arith.constant dense<0.000000e+00> : vector<16x32xf32>
    %137 = tpu.matmul %136, %118, %cst_43 {dimension_numbers = #tpu.dot_dimension_numbers<[1], [0], [0], [1], [0, 0, 1, 1], [], []>} : vector<16x16xbf16>, vector<16x32xbf16>, vector<16x32xf32> -> vector<16x32xf32>
    %138 = tpu.concatenate %68, %91, %114, %137 in 1 : vector<16x32xf32>, vector<16x32xf32>, vector<16x32xf32>, vector<16x32xf32> -> vector<16x128xf32>
    %139 = arith.truncf %138 : vector<16x128xf32> to vector<16x128xbf16>
    %c0_44 = arith.constant 0 : index
    %c384 = arith.constant 384 : index
    %140 = vector.load %arg6[%c0_44, %c384] : memref<128x512xbf16, #tpu.memory_space<vmem>>, vector<128x128xbf16>
    %cst_45 = arith.constant dense<0.000000e+00> : vector<16x128xf32>
    %141 = tpu.matmul %139, %140, %cst_45 {dimension_numbers = #tpu.dot_dimension_numbers<[1], [0], [0], [1], [0, 0, 1, 1], [], []>} : vector<16x128xbf16>, vector<128x128xbf16>, vector<16x128xf32> -> vector<16x128xf32>
    %142 = vector.broadcast %8 : vector<1x128xf32> to vector<16x128xf32>
    %143 = arith.addf %141, %142 : vector<16x128xf32>
    %144 = arith.addf %14, %143 : vector<16x128xf32>
    %cst_46 = arith.constant dense<0.000000e+00> : vector<16xf32>
    %145 = vector.multi_reduction <add>, %144, %cst_46 [1] : vector<16x128xf32> to vector<16xf32>
    %146 = vector.shape_cast %145 : vector<16xf32> to vector<16x1xf32>
    %cst_47 = arith.constant 1.280000e+02 : f32
    %147 = vector.broadcast %cst_47 : f32 to vector<16x1xf32>
    %148 = arith.divf %146, %147 : vector<16x1xf32>
    %149 = vector.broadcast %148 : vector<16x1xf32> to vector<16x128xf32>
    %150 = arith.subf %144, %149 : vector<16x128xf32>
    %151 = arith.mulf %150, %150 : vector<16x128xf32>
    %cst_48 = arith.constant dense<0.000000e+00> : vector<16xf32>
    %152 = vector.multi_reduction <add>, %151, %cst_48 [1] : vector<16x128xf32> to vector<16xf32>
    %153 = vector.shape_cast %152 : vector<16xf32> to vector<16x1xf32>
    %cst_49 = arith.constant 1.270000e+02 : f32
    %154 = vector.broadcast %cst_49 : f32 to vector<16x1xf32>
    %155 = arith.divf %153, %154 : vector<16x1xf32>
    %156 = vector.broadcast %3 : vector<1x128xf32> to vector<16x128xf32>
    %157 = arith.mulf %156, %150 : vector<16x128xf32>
    %158 = math.sqrt %155 : vector<16x1xf32>
    %cst_50 = arith.constant 9.99999997E-7 : f32
    %159 = vector.broadcast %cst_50 : f32 to vector<16x1xf32>
    %160 = arith.addf %158, %159 : vector<16x1xf32>
    %161 = vector.broadcast %160 : vector<16x1xf32> to vector<16x128xf32>
    %162 = arith.divf %157, %161 : vector<16x128xf32>
    %163 = vector.broadcast %4 : vector<1x128xf32> to vector<16x128xf32>
    %164 = arith.addf %162, %163 : vector<16x128xf32>
    %165 = arith.truncf %164 : vector<16x128xf32> to vector<16x128xbf16>
    %c0_51 = arith.constant 0 : index
    %c0_52 = arith.constant 0 : index
    %166 = vector.load %arg7[%c0_51, %c0_52] : memref<128x256xbf16, #tpu.memory_space<vmem>>, vector<128x256xbf16>
    %cst_53 = arith.constant dense<0.000000e+00> : vector<16x256xf32>
    %167 = tpu.matmul %165, %166, %cst_53 {dimension_numbers = #tpu.dot_dimension_numbers<[1], [0], [0], [1], [0, 0, 1, 1], [], []>} : vector<16x128xbf16>, vector<128x256xbf16>, vector<16x256xf32> -> vector<16x256xf32>
    %c0_54 = arith.constant 0 : index
    %c0_55 = arith.constant 0 : index
    %168 = vector.load %arg8[%c0_54, %c0_55] : memref<1x256xf32, #tpu.memory_space<vmem>>, vector<1x256xf32>
    %169 = vector.broadcast %168 : vector<1x256xf32> to vector<16x256xf32>
    %170 = arith.addf %167, %169 : vector<16x256xf32>
    %cst_56 = arith.constant 0.000000e+00 : f32
    %171 = vector.broadcast %cst_56 : f32 to vector<16x256xf32>
    %172 = arith.maximumf %170, %171 : vector<16x256xf32>
    %173 = arith.truncf %172 : vector<16x256xf32> to vector<16x256xbf16>
    %c0_57 = arith.constant 0 : index
    %c0_58 = arith.constant 0 : index
    %174 = vector.load %arg9[%c0_57, %c0_58] : memref<256x128xbf16, #tpu.memory_space<vmem>>, vector<256x128xbf16>
    %cst_59 = arith.constant dense<0.000000e+00> : vector<16x128xf32>
    %175 = tpu.matmul %173, %174, %cst_59 {dimension_numbers = #tpu.dot_dimension_numbers<[1], [0], [0], [1], [0, 0, 1, 1], [], []>} : vector<16x256xbf16>, vector<256x128xbf16>, vector<16x128xf32> -> vector<16x128xf32>
    %176 = vector.broadcast %9 : vector<1x128xf32> to vector<16x128xf32>
    %177 = arith.addf %175, %176 : vector<16x128xf32>
    %178 = arith.addf %144, %177 : vector<16x128xf32>
    %c0_60 = arith.constant 0 : index
    %c0_61 = arith.constant 0 : index
    %c0_62 = arith.constant 0 : index
    %179 = vector.load %arg10[%c0_60, %c0_61, %c0_62] : memref<1x16x128xf32, #tpu.memory_space<vmem>>, vector<1x16x128xf32>
    %180 = vector.shape_cast %179 : vector<1x16x128xf32> to vector<16x128xf32>
    %181 = vector.shape_cast %178 : vector<16x128xf32> to vector<1x16x128xf32>
    tpu.vector_store %arg10[%c0_60, %c0_61, %c0_62], %181 {strides = array<i32>} : memref<1x16x128xf32, #tpu.memory_space<vmem>>, vector<1x16x128xf32>,
    return
  }
  func.func @transform_0(%arg0: i32, %arg1: i32) -> (i32, i32, i32) {
    %c0_i32 = arith.constant 0 : i32
    %c0_i32_0 = arith.constant 0 : i32
    return %arg0, %arg1, %c0_i32 : i32, i32, i32
  }
  func.func @transform_1(%arg0: i32, %arg1: i32) -> (i32, i32, i32) {
    %c0_i32 = arith.constant 0 : i32
    %c0_i32_0 = arith.constant 0 : i32
    %c0_i32_1 = arith.constant 0 : i32
    return %arg0, %c0_i32, %c0_i32_0 : i32, i32, i32
  }
  func.func @transform_2(%arg0: i32, %arg1: i32) -> (i32, i32, i32) {
    %c0_i32 = arith.constant 0 : i32
    %c0_i32_0 = arith.constant 0 : i32
    %c0_i32_1 = arith.constant 0 : i32
    return %arg0, %c0_i32, %c0_i32_0 : i32, i32, i32
  }
  func.func @transform_3(%arg0: i32, %arg1: i32) -> (i32, i32) {
    %c0_i32 = arith.constant 0 : i32
    %c0_i32_0 = arith.constant 0 : i32
    %c0_i32_1 = arith.constant 0 : i32
    return %c0_i32, %c0_i32_0 : i32, i32
  }
  func.func @transform_4(%arg0: i32, %arg1: i32) -> (i32, i32) {
    %c0_i32 = arith.constant 0 : i32
    %c0_i32_0 = arith.constant 0 : i32
    %c0_i32_1 = arith.constant 0 : i32
    return %c0_i32, %c0_i32_0 : i32, i32
  }
  func.func @transform_5(%arg0: i32, %arg1: i32) -> (i32, i32) {
    %c0_i32 = arith.constant 0 : i32
    %c0_i32_0 = arith.constant 0 : i32
    %c0_i32_1 = arith.constant 0 : i32
    return %c0_i32, %c0_i32_0 : i32, i32
  }
  func.func @transform_6(%arg0: i32, %arg1: i32) -> (i32, i32) {
    %c0_i32 = arith.constant 0 : i32
    %c0_i32_0 = arith.constant 0 : i32
    %c0_i32_1 = arith.constant 0 : i32
    return %c0_i32, %c0_i32_0 : i32, i32
  }
  func.func @transform_7(%arg0: i32, %arg1: i32) -> (i32, i32) {
    %c0_i32 = arith.constant 0 : i32
    %c0_i32_0 = arith.constant 0 : i32
    %c0_i32_1 = arith.constant 0 : i32
    return %c0_i32, %c0_i32_0 : i32, i32
  }
  func.func @transform_8(%arg0: i32, %arg1: i32) -> (i32, i32, i32) {
    %c0_i32 = arith.constant 0 : i32
    %c0_i32_0 = arith.constant 0 : i32
    return %arg0, %arg1, %c0_i32 : i32, i32, i32
  }
}

</mosaic_0001>

<bundles_post_ra>
// kernel: _lambda_.1
= control target key start
LH: loop header
LB: loop body
LE: loop exit
PB: predicated region body
PF: predicated region fallthrough
CT: control target
= control target key end

     0   :  { %s3311_s0 = inlined_call_operand.hbm [shape: f32[2,16,128], index: 0, kind: input, shape index: {}, may-alias: {0,1}]   ;;  %s3312_s1 = inlined_call_operand.hbm [shape: f32[2,16,128], index: 1, kind: input, shape index: {}, may-alias: {0,1}]   ;;  %s3313_s2 = inlined_call_operand.hbm [shape: f32[2,1,16], index: 2, kind: input, shape index: {}]   ;;  %s3314_s3 = inlined_call_operand.hbm [shape: f32[9,128], index: 3, kind: input, shape index: {}]   ;;  %s3315_s4 = inlined_call_operand.hbm [shape: bf16[128,512], index: 4, kind: input, shape index: {}]   ;;  %s3316_s5 = inlined_call_operand.hbm [shape: bf16[128,256], index: 5, kind: input, shape index: {}]   ;;  %s3317_s6 = inlined_call_operand.vmem [shape: f32[1,256], index: 6, kind: input, shape index: {}]   ;;  %s3318_s7 = inlined_call_operand.hbm [shape: bf16[256,128], index: 7, kind: input, shape index: {}]   ;;  %s3319_s8 = inlined_call_operand.hbm [shape: f32[2,16,128], index: 8, kind: output, shape index: {}]  }
   0x1   :  { %3332 = sst [smem:[#allocation28_spill]] %s3312_s1 }
   0x2   :  { %3333 = sst [smem:[#allocation29_spill]] %s3314_s3 }
   0x3   :  { %3334 = sst [smem:[#allocation30_spill]] %s3315_s4 }
   0x4   :  { %3335 = sst [smem:[#allocation31_spill]] %s3316_s5 }
   0x5   :  { %3336 = sst [smem:[#allocation32_spill]] %s3319_s8 }
   0x6   :  { %13 = vsyncpa [#allocation5], 0 }
   0x7   :  { %15 = vsyncpa [#allocation5 + $0x1], 0 }
   0x8   :  { %16 = vsyncpa [#allocation8], 0 }
   0x9   :  { %18 = vsyncpa [#allocation8 + $0x1], 0 }
   0xa   :  { %19 = vsyncpa [#allocation11], 0 }
   0xb   :  { %20 = vsyncpa [#allocation14], 0 }
   0xc   :  { %21 = vsyncpa [#allocation6], 0 }
   0xd   :  { %23 = vsyncpa [#allocation6 + $0x1], 0  ;;  %s2847_s27 = smov 0   ;;  %s2849_s28 = smov 0  }
   0xe   :  { %s2851_s29 = smov 0   ;;  %s2853_s30 = smov 0  }
   0xf   :  { %s2855_s9 = smov 0   ;;  %s2857_s10 = smov 0  }
  0x10 LB: > { %3337 = sst [smem:[#allocation22_spill]] %s2762_s27  ;;  %s2878_s11 = sadd.s32 4294967295, %s2782_s10   ;;  %s2782_s10 = sphi %s2857_s10, %s29_s10   ;;  %s2778_s9 = sphi %s2855_s9, %s3377_s9   ;;  %s2774_s30 = sphi %s2853_s30, %s3376_s30   ;;  %s2770_s29 = sphi %s2851_s29, %s3375_s29   ;;  %s2766_s28 = sphi %s2849_s28, %s3374_s28   ;;  %s2762_s27 = sphi %s2847_s27, %s3373_s27  }
  0x11   : > { %3338 = sst [smem:[#allocation23_spill]] %s2774_s30  ;;  %s1896_s12 = sadd.s32 4294967294, %s2782_s10  }
  0x12   : > { %p63_p0 = scmp.ne.s32.totalorder %s2766_s28, %s2762_s27  ;;  %p64_p1 = scmp.eq.s32.totalorder %s2878_s11, 0 }
  0x13   : > { %p246_p2 = scmp.eq.s32.totalorder %s2878_s11, 1  ;;  %p252_p3 = scmp.eq.s32.totalorder %s1896_s12, 1 }
  0x14   : > { %p2887_p4 = por %p64_p1, %p63_p0  ;;  %p1897_p5 = scmp.ge.s32.totalorder %s2782_s10, 1 }
  0x15   : > { %p2892_p6 = por %p252_p3, %p63_p0  ;;  %p259_p7 = scmp.lt.s32.totalorder %s2782_s10, 3 }
  0x16   : > { %s3342_s3 = sld [smem:[#allocation29_spill]]  ;;  %s2784_s19 = smov [#allocation10]  }
  0x17   : > { %s3340_s14 = scalar_select %p2892_p6, 1, 0 }
  0x18   : > { %p2900_p8 = pnand %p1897_p5, %p259_p7  ;;  %s272_s20 = sshll.u32 %s2784_s19, 4  ;;  %s273_s20 = int_to_ptr.vmem [resolvable:$true] %s272_s20 }
  0x19   : > { %3341 = sst [smem:[#allocation24_spill]] %s3340_s14  ;;  %s3320_s25 = smov 128  }
  0x1a   : > { %p2297_p9 = pneg %p2900_p8  ;;  %s3345_s5 = sld [smem:[#allocation31_spill]] }
  0x1b   : > { %s3322_s26 = smov 8   ;;  %s2787_s12 = smov [#allocation13]  }
  0x1c   : > { %s270_s17 = sshll.u32 %s3342_s3, 4  ;;  %p2908_p10 = pnand %p2297_p9, %p64_p1  ;;  %s271_s17 = int_to_ptr.hbm [resolvable:$true] %s270_s17 }
  0x1d   : > { %s300_s15 = sshll.u32 %s2787_s12, 4  ;;  %s41_s16 = sadd.s32 1, %s2778_s9  ;;  %s301_s15 = int_to_ptr.vmem [resolvable:$true] %s300_s15 }
  0x1e   : > { %2300 = dma.hbm_to_vmem [thread:$0]  (!%p2908_p10), %s271_s17, 256, %s273_s20, [#allocation11], %s3320_s25, %s3320_s25, %s3322_s26  }
  0x1f   : > { %s50_s19 = sadd.s32 1, %s2770_s29  ;;  %p43_p12 = scmp.ge.s32.totalorder %s41_s16, 2 }
  0x20   : > { %s298_s24 = sshll.u32 %s3345_s5, 4  ;;  %p57_p13 = scmp.ne.s32.totalorder %s2770_s29, %s2766_s28  ;;  %s299_s24 = int_to_ptr.hbm [resolvable:$true] %s298_s24 }
  0x21   : > { %2306 = dma.hbm_to_vmem [thread:$0]  (!%p2908_p10), %s299_s24, 2048, %s301_s15, [#allocation14], %s3320_s25, %s3320_s25, %s3322_s26  }
  0x22   : > { %p58_p0 = scmp.eq.s32.totalorder %s2782_s10, 0  ;;  %p2328_p3 = scmp.lt.s32.totalorder %s2782_s10, 2 }
  0x23   : > { %s3379_s16 = smov (%p43_p12, %s41_s16), 0  ;;  %p2936_p7 = por %p246_p2, %p57_p13 }
  0x24   : > { %3346 = sst [smem:[#allocation25_spill]] %s3379_s16  ;;  %p59_p5 = por %p58_p0, %p57_p13 }
  0x25   : > { %s3347_s17 = scalar_select %p2936_p7, 1, 0 }
  0x26   : > { %s45_s20 = ssub.s32 %s2778_s9, %s3379_s16  ;;  %s2943_s22 = sand.u32 1, %s2770_s29  }
  0x27   : > { %3348 = sst [smem:[#allocation26_spill]] %s3347_s17  ;;  %p48_p9 = scmp.eq.s32.totalorder %s45_s20, 0 }
  0x28   : > { %s3330_s23 = sshll.u32 %s2943_s22, 4  ;;  %s3331_s24 = sshll.u32 %s2778_s9, 4 }
  0x29   : > { %p2947_p11 = pnand %p2328_p3, %p59_p5  ;;  %s355_s25 = sand.u32 1, %s2782_s10  }
  0x2a   : > { %s2952_s15 = scalar_select %p48_p9, %s2770_s29, %s50_s19  }
  0x2b   : > { %s3351_s1 = sld [smem:[#allocation28_spill]]  ;;  %s359_s16 = scalar_lea.vmem [#allocation7], %s3330_s23 }
  0x2c   : > { %3350 = sst [smem:[#allocation27_spill]] %s2952_s15  ;;  %s367_s14 = sshll.u32 %s359_s16, 4  ;;  %s368_s14 = int_to_ptr.vmem [resolvable:$true] %s367_s14 }
  0x2d   : > { %s3352_s4 = sld [smem:[#allocation30_spill]]  ;;  %s2965_s30 = scalar_lea.sflag [#allocation8], %s355_s25 }
  0x2e   : > { %s3353_s19 = smov 8   ;;  %s3354_s15 = smov 128  }
  0x2f   : > { %s2788_s3 = smov [#allocation12]   ;;  %s2789_s26 = smov 256  }
  0x30   : > { %s2790_s16 = smov 16   ;;  %s315_s17 = sshll.u32 %s3318_s7, 4  ;;  %s316_s17 = int_to_ptr.hbm [resolvable:$true] %s315_s17 }
  0x31   : > { %s364_s5 = scalar_lea.hbm %s3351_s1, %s3331_s24  ;;  %s2791_s23 = smov [#allocation15]  }
  0x32   : > { %s365_s20 = sshll.u32 %s364_s5, 4  ;;  %s286_s5 = sshll.u32 %s2788_s3, 4  ;;  %s366_s20 = int_to_ptr.hbm [resolvable:$true] %s365_s20  ;;  %s287_s5 = int_to_ptr.vmem [resolvable:$true] %s286_s5 }
  0x33   : > { %s284_s8 = sshll.u32 %s3352_s4, 4  ;;  %s2793_s24 = smov 4   ;;  %s285_s8 = int_to_ptr.hbm [resolvable:$true] %s284_s8 }
  0x34   : > { %2316 = dma.hbm_to_vmem [thread:$0]  (!%p2947_p11), %s366_s20, 256, %s368_s14, %s2965_s30, %s3354_s15, %s3354_s15, %s3353_s19  }
  0x35   : > { %2303 = dma.hbm_to_vmem [thread:$0]  (!%p2908_p10), %s285_s8, 4096, %s287_s5, [#allocation11], %s2789_s26, %s2789_s26, %s2790_s16  }
  0x36   : > { %s317_s14 = sshll.u32 %s2791_s23, 4  ;;  %s2792_s20 = smov 64   ;;  %s318_s14 = int_to_ptr.vmem [resolvable:$true] %s317_s14 }
  0x37   : > { %2309 = dma.hbm_to_vmem [thread:$0]  (!%p2908_p10), %s316_s17, 2048, %s318_s14, [#allocation14], %s2792_s20, %s2792_s20, %s2793_s24  }
  0x38   : > { %s3355_s3 = sshll.u32 %s2778_s9, 4  ;;  %s3356_s16 = sshll.u32 %s2943_s22, 4 }
  0x39   : > { %s342_s5 = scalar_lea.hbm %s3311_s0, %s3355_s3  ;;  %s335_s27 = scalar_lea.vmem [#allocation4], %s3356_s16 }
  0x3a   : > { %s343_s26 = sshll.u32 %s342_s5, 4  ;;  %s345_s25 = sshll.u32 %s335_s27, 4  ;;  %s344_s26 = int_to_ptr.hbm [resolvable:$true] %s343_s26  ;;  %s346_s25 = int_to_ptr.vmem [resolvable:$true] %s345_s25 }
  0x3b   : > { %s332_s4 = scalar_lea.sflag [#allocation5], %s2943_s22  ;;  %s383_s24 = scalar_lea.hbm %s3313_s2, %s2778_s9 }
  0x3c   : > { %2313 = dma.hbm_to_vmem [thread:$0]  (!%p2947_p11), %s344_s26, 256, %s346_s25, %s332_s4, %s3354_s15, %s3354_s15, %s3353_s19  }
  0x3d   : > { %s385_s17 = sshll.u32 %s383_s24, 4  ;;  %s380_s14 = scalar_lea.vmem [#allocation9], %s2943_s22  ;;  %s386_s17 = int_to_ptr.hbm [resolvable:$true] %s385_s17 }
  0x3e   : > { %s387_s1 = sshll.u32 %s380_s14, 4  ;;  %396 = sbr.rel (%p2900_p8) target bundleno = 2331 (0x91b), region = 52  ;;  %s388_s1 = int_to_ptr.vmem [resolvable:$true] %s387_s1 }
  0x3f   : > { %2319 = dma.hbm_to_vmem [thread:$0]  (!%p2947_p11), %s386_s17, 16, %s388_s1, %s2965_s30  }
  0x40   : > { %s3004_s20 = sand.u32 (!%p2900_p8), 1, %s2766_s28  }
  0x41   : > { %s3007_s4 = sshll.u32 (!%p2900_p8), %s3004_s20, 4  ;;  %s399_s15 = scalar_lea.sflag (!%p2900_p8), [#allocation5], %s3004_s20 }
  0x42   : > { %s3011_s19 = scalar_lea.vmem (!%p2900_p8), [#allocation4], %s3007_s4 }
  0x43   : > { %2741 = dma.done.wait (%p2887_p4), %s399_s15, 256  }
  0x44   : > { %2743 = vsyncadd (%p2887_p4), %s399_s15, 4294967040  ;;  %s408_s30 = sand.u32 1, %s2878_s11   ;;  %s412_s22 = scalar_lea.vmem [#allocation7], %s3007_s4 }
  0x45   : > { %s409_s18 = scalar_lea.sflag [#allocation8], %s408_s30 }
  0x46   : > { %2745 = dma.done.wait (%p2887_p4), %s409_s18, 272  }
  0x47   : > { %2747 = vsyncadd (%p2887_p4), %s409_s18, 4294967024  ;;  %s421_s12 = scalar_lea.vmem [#allocation9], %s3004_s20 }
  0x48   : > { %2749 = dma.done.wait (%p64_p1), [#allocation11], 4352  }
  0x49   : > { %2751 = vsyncadd (%p64_p1), [#allocation11], 4294962944 }
  0x4a   : > { %2753 = dma.done.wait (%p64_p1), [#allocation14], 4096  }
  0x4b   : > { %2755 = vsyncadd (%p64_p1), [#allocation14], 4294963200  ;;  %v754_v0 = vld [vmem:[%s3011_s19] sm:$0xff]  ;;  %v755_v2 = vld [vmem:[%s3011_s19 + $0x8] sm:$0xff]  ;;  %v2794_v4 = vmov 128.0   ;;  %v2795_v27 = vmov 127.0  }
  0x4c   : > { %v493_v1 = vld [vmem:[%s412_s22] sm:$0xff]  ;;  %756 = vadd.xlane.f32.xlu1 %v754_v0  ;;  %v494_v3 = vld [vmem:[%s412_s22 + $0x8] sm:$0xff]  ;;  %2416 = vrcp.f32 %v2794_v4  ;;  %s2797_s11 = smov 64   ;;  %s2798_s13 = smov 96  }
  0x4d   : > { %495 = vadd.xlane.f32.xlu0 %v493_v1  ;;  %2418 = vrcp.f32 %v2795_v27  ;;  %v1947_v32 = vld [vmem:[#allocation12 + $0xe4] sm:$0xf]  ;;  %v2203_v33 = vld [vmem:[#allocation12 + $0xf0] sm:$0xf0]  ;;  %v1979_v34 = vld [vmem:[#allocation12 + $0xe8] sm:$0xf] }
  0x4e   : > { %v1948_v35 = vor.u32 %v2203_v33, %v1947_v32  ;;  %v2211_v36 = vld [vmem:[#allocation12 + $0xf4] sm:$0xf0]  ;;  %v2011_v37 = vld [vmem:[#allocation12 + $0xe0] sm:$0xf]  ;;  %v2219_v38 = vld [vmem:[#allocation12 + $0xec] sm:$0xf0] }
  0x4f   : > { %v1980_v40 = vor.u32 %v2211_v36, %v1979_v34  ;;  %v2012_v41 = vor.u32 %v2219_v38, %v2011_v37  ;;  %v1943_v42 = vld [vmem:[#allocation12 + $0xc4] sm:$0xf]  ;;  %v2202_v43 = vld [vmem:[#allocation12 + $0xd0] sm:$0xf0]  ;;  %v1975_v44 = vld [vmem:[#allocation12 + $0xc8] sm:$0xf] }
  0x50   : > { %653 = vmatpush.bf16.msra.mxu0 %v1948_v35  ;;  %v1944_v45 = vor.u32 %v2202_v43, %v1943_v42  ;;  %v2210_v46 = vld [vmem:[#allocation12 + $0xd4] sm:$0xf0]  ;;  %v2007_v47 = vld [vmem:[#allocation12 + $0xc0] sm:$0xf]  ;;  %v2218_v48 = vld [vmem:[#allocation12 + $0xcc] sm:$0xf0] }
  0x51   : > { %732 = vmatpush.bf16.msra.mxu1 %v1980_v40  ;;  %914 = vmatpush.bf16.msra.mxu2 %v2012_v41  ;;  %v1976_v50 = vor.u32 %v2210_v46, %v1975_v44  ;;  %v2008_v51 = vor.u32 %v2218_v48, %v2007_v47  ;;  %v1939_v52 = vld [vmem:[#allocation12 + $0xa4] sm:$0xf]  ;;  %v2201_v53 = vld [vmem:[#allocation12 + $0xb0] sm:$0xf0]  ;;  %v1971_v54 = vld [vmem:[#allocation12 + $0xa8] sm:$0xf] }
  0x52   : > { %v2417_v5 = vpop.eup %2416  ;;  %v1940_v55 = vor.u32 %v2201_v53, %v1939_v52  ;;  %v2209_v56 = vld [vmem:[#allocation12 + $0xb4] sm:$0xf0]  ;;  %v2003_v57 = vld [vmem:[#allocation12 + $0xa0] sm:$0xf]  ;;  %v2217_v58 = vld [vmem:[#allocation12 + $0xac] sm:$0xf0] }
  0x53   : > { %v500_v6 = vmul.f32 128.0, %v2417_v5  ;;  %vm504_vm0 = vweird.f32 %v2417_v5  ;;  %v2419_v28 = vpop.eup %2418  ;;  %v1972_v61 = vor.u32 %v2209_v56, %v1971_v54  ;;  %v2004_v62 = vor.u32 %v2217_v58, %v2003_v57  ;;  %v1935_v63 = vld [vmem:[#allocation12 + $0x84] sm:$0xf]  ;;  %v2208_v4 = vld [vmem:[#allocation12 + $0x94] sm:$0xf0]  ;;  %s2799_s3 = smov 32  }
  0x54   : > { %758 = vadd.xlane.f32.xlu1 %v755_v2  ;;  %v517_v29 = vmul.f32 127.0, %v2419_v28  ;;  %vm521_vm1 = vweird.f32 %v2419_v28  ;;  %654 = vmatpush.bf16.msra.mxu0 %v1944_v45  ;;  %v2198_v27 = vld [vmem:[#allocation12 + $0x50] sm:$0xf0]  ;;  %v2206_v32 = vld [vmem:[#allocation12 + $0x54] sm:$0xf0]  ;;  %s3365_s26 = sld [smem:[#allocation23_spill]] }
  0x55   : > { %497 = vadd.xlane.f32.xlu0 %v494_v3  ;;  %v501_v7 = vsub.f32 1.0, %v500_v6  ;;  %733 = vmatpush.bf16.msra.mxu1 %v1976_v50  ;;  %v2216_v6 = vld [vmem:[#allocation12 + $0x8c] sm:$0xf0]  ;;  %v1991_v33 = vld [vmem:[#allocation12 + $0x40] sm:$0xf]  ;;  %s483_s27 = scalar_lea.vmem [#allocation16], %s3007_s4 }
  0x56   : > { %v518_v30 = vsub.f32 1.0, %v517_v29  ;;  %915 = vmatpush.bf16.msra.mxu2 %v2008_v51  ;;  %v2214_v34 = vld [vmem:[#allocation12 + $0x4c] sm:$0xf0]  ;;  %v1923_v42 = vld [vmem:[#allocation12 + $0x24] sm:$0xf]  ;;  %s3366_s23 = sld [smem:[#allocation32_spill]] }
  0x57   : > { %v502_v8 = vmul.f32 %v2417_v5, %v501_v7  ;;  %v1992_v41 = vor.u32 %v2214_v34, %v1991_v33  ;;  %v2197_v43 = vld [vmem:[#allocation12 + $0x30] sm:$0xf0]  ;;  %v1955_v44 = vld [vmem:[#allocation12 + $0x28] sm:$0xf]  ;;  %v2205_v46 = vld [vmem:[#allocation12 + $0x34] sm:$0xf0] }
  0x58   : > { %v519_v31 = vmul.f32 %v2419_v28, %v518_v30  ;;  %655 = vmatpush.bf16.msra.mxu0 %v1940_v55  ;;  %v1987_v47 = vld [vmem:[#allocation12 + $0x20] sm:$0xf]  ;;  %v2213_v48 = vld [vmem:[#allocation12 + $0x2c] sm:$0xf0]  ;;  %v1924_v52 = vor.u32 %v2197_v43, %v1923_v42  ;;  %v1919_v53 = vld [vmem:[#allocation12 + $0x4] sm:$0xf]  ;;  %v1956_v56 = vor.u32 %v2205_v46, %v1955_v44 }
  0x59   : > { %v503_v9 = vadd.f32 %v2417_v5, %v502_v8  ;;  %734 = vmatpush.bf16.msra.mxu1 %v1972_v61  ;;  %v2196_v54 = vld [vmem:[#allocation12 + $0x10] sm:$0xf0]  ;;  %v1988_v57 = vor.u32 %v2213_v48, %v1987_v47  ;;  %v1951_v58 = vld [vmem:[#allocation12 + $0x8] sm:$0xf]  ;;  %s1728_s14 = sshll.u32 %s483_s27, 4  ;;  %s1714_s15 = scalar_lea.sflag [#allocation6], %s3004_s20  ;;  %s1729_s14 = int_to_ptr.vmem [resolvable:$true] %s1728_s14 }
  0x5a   : > { %v520_v39 = vadd.f32 %v2419_v28, %v519_v31  ;;  %916 = vmatpush.bf16.msra.mxu2 %v2004_v62  ;;  %v1983_v62 = vld [vmem:[#allocation12] sm:$0xf]  ;;  %v3102_v46 = vld [vmem:[#allocation10] sm:$0xff]  ;;  %s2262_s16 = sshll.u32 %s3365_s26, 4 }
  0x5b   : > { %v3034_v10 = vsel %vm504_vm0, %v2417_v5, %v503_v9  ;;  %v1999_v5 = vld [vmem:[#allocation12 + $0x80] sm:$0xf] }
  0x5c   : > { %v3056_v49 = vsel %vm521_vm1, %v2419_v28, %v520_v39  ;;  %v2000_v9 = vor.u32 %v2216_v6, %v1999_v5  ;;  %v1959_v28 = vld [vmem:[#allocation12 + $0x48] sm:$0xf]  ;;  %s1727_s24 = scalar_lea.hbm %s3366_s23, %s2262_s16  ;;  %s2708_s22 = scalar_lea.hbm %s3366_s23, 32 }
  0x5d   : > { %v1960_v40 = vor.u32 %v2206_v32, %v1959_v28  ;;  %s1730_s1 = sshll.u32 %s1727_s24, 4  ;;  %s1731_s1 = int_to_ptr.hbm [resolvable:$true] %s1730_s1 }
  0x5e   : > { %917 = vmatpush.bf16.msra.mxu2 %v2000_v9 }
  0xbf   : > { %v757_v11 = vpop.xlane.xlu1 %756 }
  0xc0   : > { %v496_v12 = vpop.xlane.xlu0 %495  ;;  %v767_v13 = vmul.f32 %v757_v11, %v3034_v10  ;;  %v1931_v11 = vld [vmem:[#allocation12 + $0x64] sm:$0xf] }
  0xc1   : > { %v506_v14 = vmul.f32 %v3034_v10, %v496_v12  ;;  %v2199_v12 = vld [vmem:[#allocation12 + $0x70] sm:$0xf0] }
  0xc2   : > { %v3038_v15 = vsub.f32 %v754_v0, %v767_v13  ;;  %v2200_v0 = vld [vmem:[#allocation12 + $0x90] sm:$0xf0]  ;;  %v1963_v13 = vld [vmem:[#allocation12 + $0x68] sm:$0xf] }
  0xc3   : > { %v3040_v16 = vsub.f32 %v493_v1, %v506_v14  ;;  %v1967_v1 = vld [vmem:[#allocation12 + $0x88] sm:$0xf]  ;;  %v1936_v7 = vor.u32 %v2200_v0, %v1935_v63  ;;  %v2207_v14 = vld [vmem:[#allocation12 + $0x74] sm:$0xf0]  ;;  %v2212_v63 = vld [vmem:[#allocation12 + $0xc] sm:$0xf0] }
  0xc4   : > { %v771_v17 = vmul.f32 %v3038_v15, %v3038_v15  ;;  %v1968_v8 = vor.u32 %v2208_v4, %v1967_v1 }
  0xc5   : > { %v510_v18 = vmul.f32 %v3040_v16, %v3040_v16  ;;  %656 = vmatpush.bf16.msra.mxu0 %v1936_v7  ;;  %v1920_v7 = vor.u32 %v2196_v54, %v1919_v53 }
  0xc6   : > { %773 = vadd.xlane.f32.xlu0 %v771_v17  ;;  %v1995_v17 = vld [vmem:[#allocation12 + $0x60] sm:$0xf]  ;;  %735 = vmatpush.bf16.msra.mxu1 %v1968_v8 }
  0xc7   : > { %512 = vadd.xlane.f32.xlu2 %v510_v18  ;;  %v759_v19 = vpop.xlane.xlu1 %758  ;;  %v2215_v18 = vld [vmem:[#allocation12 + $0x6c] sm:$0xf0] }
  0xc8   : > { %v498_v20 = vpop.xlane.xlu0 %497  ;;  %v768_v21 = vmul.f32 %v759_v19, %v3034_v10  ;;  %v1932_v19 = vor.u32 %v2199_v12, %v1931_v11  ;;  %v1984_v12 = vor.u32 %v2212_v63, %v1983_v62 }
  0xc9   : > { %v507_v22 = vmul.f32 %v3034_v10, %v498_v20 }
  0xca   : > { %v3048_v23 = vsub.f32 %v755_v2, %v768_v21  ;;  %657 = vmatpush.bf16.msra.mxu0 %v1932_v19 }
  0xcb   : > { %v3050_v24 = vsub.f32 %v494_v3, %v507_v22  ;;  %v1964_v22 = vor.u32 %v2207_v14, %v1963_v13 }
  0xcc   : > { %v772_v25 = vmul.f32 %v3048_v23, %v3048_v23 }
  0xcd   : > { %v511_v26 = vmul.f32 %v3050_v24, %v3050_v24  ;;  %736 = vmatpush.bf16.msra.mxu1 %v1964_v22 }
  0xce   : > { %775 = vadd.xlane.f32.xlu1 %v772_v25  ;;  %v1996_v25 = vor.u32 %v2215_v18, %v1995_v17 }
  0xcf   : > { %514 = vadd.xlane.f32.xlu2 %v511_v26  ;;  %v1927_v26 = vld [vmem:[#allocation12 + $0x44] sm:$0xf] }
  0xd0   : > { %v1928_v38 = vor.u32 %v2198_v27, %v1927_v26  ;;  %918 = vmatpush.bf16.msra.mxu2 %v1996_v25 }
  0xd1   : > { %737 = vmatpush.bf16.msra.mxu1 %v1960_v40 }
  0xd2   : > { %658 = vmatpush.bf16.msra.mxu0 %v1928_v38 }
  0xd4   : > { %919 = vmatpush.bf16.msra.mxu2 %v1992_v41 }
  0xd5   : > { %738 = vmatpush.bf16.msra.mxu1 %v1956_v56 }
  0xd6   : > { %659 = vmatpush.bf16.msra.mxu0 %v1924_v52 }
  0xd8   : > { %920 = vmatpush.bf16.msra.mxu2 %v1988_v57 }
  0xda   : > { %660 = vmatpush.bf16.msra.mxu0 %v1920_v7 }
  0xdc   : > { %921 = vmatpush.bf16.msra.mxu2 %v1984_v12 }
 0x139   : > { %v774_v60 = vpop.xlane.xlu0 %773 }
 0x13a   : > { %v513_v59 = vpop.xlane.xlu2 %512  ;;  %v3062_v3 = vmul.f32 %v774_v60, %v3056_v49 }
 0x13b   : > { %v3059_v2 = vmul.f32 %v3056_v49, %v513_v59  ;;  %v2204_v59 = vld [vmem:[#allocation12 + $0x14] sm:$0xf0] }
 0x13c   : > { %v1952_v8 = vor.u32 %v2204_v59, %v1951_v58  ;;  %vm796_vm3 = vcmp.eq.f32.partialorder %v3062_v3, inf  ;;  %v799_v18 = vand.u32 2147483648, %v3062_v3  ;;  %vm798_vm5 = vcmp.eq.f32.partialorder %v3062_v3, 0.0 }
 0x13d   : > { %2420 = vrsqrt.f32 %v3059_v2  ;;  %vm535_vm2 = vcmp.eq.f32.partialorder %v3059_v2, inf  ;;  %v538_v13 = vand.u32 2147483648, %v3059_v2  ;;  %vm537_vm4 = vcmp.eq.f32.partialorder %v3059_v2, 0.0 }
 0x13e   : > { %2422 = vrsqrt.f32 %v3062_v3  ;;  %739 = vmatpush.bf16.msra.mxu1 %v1952_v8 }
 0x141   : > { %v776_v20 = vpop.xlane.xlu1 %775 }
 0x142   : > { %v515_v21 = vpop.xlane.xlu2 %514  ;;  %v3067_v30 = vmul.f32 %v776_v20, %v3056_v49 }
 0x143   : > { %v2421_v29 = vpop.eup %2420  ;;  %v3070_v31 = vmul.f32 %v3056_v49, %v515_v21 }
 0x144   : > { %v2423_v35 = vpop.eup %2422  ;;  %v529_v36 = vmul.f32 %v2421_v29, %v3059_v2  ;;  %2424 = vrsqrt.f32 %v3067_v30  ;;  %vm808_vm6 = vcmp.eq.f32.partialorder %v3067_v30, inf  ;;  %vm810_vm8 = vcmp.eq.f32.partialorder %v3067_v30, 0.0 }
 0x145   : > { %v790_v37 = vmul.f32 %v2423_v35, %v3062_v3  ;;  %2426 = vrsqrt.f32 %v3070_v31  ;;  %vm547_vm7 = vcmp.eq.f32.partialorder %v3070_v31, inf  ;;  %vm549_vm9 = vcmp.eq.f32.partialorder %v3070_v31, 0.0 }
 0x146   : > { %v530_v39 = vmul.f32 %v2421_v29, %v529_v36 }
 0x147   : > { %v791_v45 = vmul.f32 %v2423_v35, %v790_v37 }
 0x148   : > { %v531_v50 = vmul.f32 0.5, %v530_v39 }
 0x149   : > { %v792_v51 = vmul.f32 0.5, %v791_v45 }
 0x14a   : > { %v532_v55 = vsub.f32 1.5, %v531_v50  ;;  %v2425_v60 = vpop.eup %2424 }
 0x14b   : > { %v793_v61 = vsub.f32 1.5, %v792_v51  ;;  %v2427_v0 = vpop.eup %2426  ;;  %v802_v4 = vmul.f32 %v2425_v60, %v3067_v30 }
 0x14c   : > { %v533_v1 = vmul.f32 %v2421_v29, %v532_v55  ;;  %v541_v6 = vmul.f32 %v2427_v0, %v3070_v31 }
 0x14d   : > { %v794_v5 = vmul.f32 %v2423_v35, %v793_v61  ;;  %v803_v11 = vmul.f32 %v2425_v60, %v802_v4  ;;  %v811_v35 = vand.u32 2147483648, %v3067_v30 }
 0x14e   : > { %v534_v9 = vmul.f32 %v533_v1, %v3059_v2  ;;  %v542_v17 = vmul.f32 %v2427_v0, %v541_v6 }
 0x14f   : > { %v795_v14 = vmul.f32 %v794_v5, %v3062_v3  ;;  %v804_v19 = vmul.f32 0.5, %v803_v11 }
 0x150   : > { %v536_v20 = vsel %vm535_vm2, %v3059_v2, %v534_v9  ;;  %v543_v21 = vmul.f32 0.5, %v542_v17 }
 0x151   : > { %v539_v22 = vsel %vm537_vm4, %v538_v13, %v536_v20  ;;  %v797_v25 = vsel %vm796_vm3, %v3062_v3, %v795_v14  ;;  %v805_v26 = vsub.f32 1.5, %v804_v19  ;;  %v550_v3 = vand.u32 2147483648, %v3070_v31 }
 0x152   : > { %v552_v27 = vadd.f32 1e-06, %v539_v22  ;;  %v800_v28 = vsel %vm798_vm5, %v799_v18, %v797_v25  ;;  %v544_v29 = vsub.f32 1.5, %v543_v21  ;;  %v584_v25 = vperm.slane %v3102_v46, 1 }
 0x153   : > { %v813_v32 = vadd.f32 1e-06, %v800_v28  ;;  %v806_v33 = vmul.f32 %v2425_v60, %v805_v26 }
 0x154   : > { %2428 = vrcp.f32 %v552_v27  ;;  %v545_v34 = vmul.f32 %v2427_v0, %v544_v29  ;;  %v563_v51 = vand.u32 2147483647, %v552_v27  ;;  %v565_v53 = vand.u32 2147483648, %v552_v27  ;;  %v934_v0 = vld [vmem:[%s421_s12] sm:$0x1] }
 0x155   : > { %2430 = vrcp.f32 %v813_v32  ;;  %v807_v2 = vmul.f32 %v806_v33, %v3067_v30  ;;  %v824_v54 = vand.u32 2147483647, %v813_v32  ;;  %v826_v58 = vand.u32 2147483648, %v813_v32 }
 0x156   : > { %v546_v36 = vmul.f32 %v545_v34, %v3070_v31  ;;  %vm820_vm12 = vweird.f32 %v813_v32  ;;  %vm559_vm13 = vweird.f32 %v552_v27  ;;  %vm3111_vm14 = vcmp.eq.f32.partialorder %v563_v51, 8.507059e+37 }
 0x157   : > { %v809_v37 = vsel %vm808_vm6, %v3067_v30, %v807_v2  ;;  %vm825_vm1 = vcmp.eq.f32.partialorder %v824_v54, 8.507059e+37  ;;  %v827_v8 = vor.u32 1.1754944e-38, %v826_v58 }
 0x158   : > { %v548_v38 = vsel %vm547_vm7, %v3070_v31, %v546_v36  ;;  %v812_v39 = vsel %vm810_vm8, %v811_v35, %v809_v37  ;;  %v525_v31 = vperm.slane %v3102_v46, 0 }
 0x159   : > { %v551_v41 = vsel %vm549_vm9, %v550_v3, %v548_v38  ;;  %v3098_v42 = vadd.f32 1e-06, %v812_v39 }
 0x15a   : > { %v2429_v40 = vpop.eup %2428  ;;  %v3100_v44 = vadd.f32 1e-06, %v551_v41  ;;  %v787_v60 = vmul.f32 %v3038_v15, %v525_v31  ;;  %v526_v61 = vmul.f32 %v525_v31, %v3040_v16  ;;  %v788_v63 = vmul.f32 %v3048_v23, %v525_v31 }
 0x15b   : > { %v2431_v43 = vpop.eup %2430  ;;  %v555_v45 = vmul.f32 %v2429_v40, %v552_v27  ;;  %2432 = vrcp.f32 %v3098_v42  ;;  %vm560_vm11 = vweird.f32 %v2429_v40  ;;  %v566_v16 = vor.u32 1.1754944e-38, %v565_v53 }
 0x15c   : > { %v816_v47 = vmul.f32 %v2431_v43, %v813_v32  ;;  %2434 = vrcp.f32 %v3100_v44  ;;  %vm821_vm10 = vweird.f32 %v2431_v43  ;;  %vm3121_vm0 = vmor %vm559_vm13, %vm560_vm11  ;;  %v841_v9 = vand.u32 2147483648, %v3098_v42 }
 0x15d   : > { %v556_v48 = vsub.f32 1.0, %v555_v45  ;;  %vm3117_vm15 = vmor %vm820_vm12, %vm821_vm10  ;;  %v580_v11 = vand.u32 2147483648, %v3100_v44  ;;  %v839_v13 = vand.u32 2147483647, %v3098_v42  ;;  %v578_v17 = vand.u32 2147483647, %v3100_v44 }
 0x15e   : > { %v817_v30 = vsub.f32 1.0, %v816_v47  ;;  %v527_v19 = vmul.f32 %v525_v31, %v3050_v24  ;;  %vm835_vm4 = vweird.f32 %v3098_v42  ;;  %vm574_vm5 = vweird.f32 %v3100_v44 }
 0x15f   : > { %v557_v50 = vmul.f32 %v2429_v40, %v556_v48  ;;  %v842_v26 = vor.u32 1.1754944e-38, %v841_v9  ;;  %v581_v27 = vor.u32 1.1754944e-38, %v580_v11  ;;  %vm840_vm8 = vcmp.eq.f32.partialorder %v839_v13, 8.507059e+37 }
 0x160   : > { %v818_v52 = vmul.f32 %v2431_v43, %v817_v30  ;;  %vm579_vm9 = vcmp.eq.f32.partialorder %v578_v17, 8.507059e+37  ;;  %vm941_vm10 = vcmask 261120   ;;  %vm962_vm11 = vcmp.gt.f32.partialorder %v934_v0, 0.0 }
 0x161   : > { %v2433_v55 = vpop.eup %2432  ;;  %v558_v56 = vadd.f32 %v2429_v40, %v557_v50  ;;  %vm968_vm13 = vcmask 130048  }
 0x162   : > { %v819_v57 = vadd.f32 %v2431_v43, %v818_v52  ;;  %v2435_v59 = vpop.eup %2434  ;;  %v831_v62 = vmul.f32 %v2433_v55, %v3098_v42  ;;  %vm836_vm2 = vweird.f32 %v2433_v55 }
 0x163   : > { %v570_v1 = vmul.f32 %v2435_v59, %v3100_v44  ;;  %v562_v6 = vsel %vm3121_vm0, %v2429_v40, %v558_v56  ;;  %vm575_vm3 = vweird.f32 %v2435_v59  ;;  %vm837_vm6 = vmor %vm835_vm4, %vm836_vm2  ;;  %v683_v44 = vperm.slane %v3102_v46, 6 }
 0x164   : > { %v823_v23 = vsel %vm3117_vm15, %v2431_v43, %v819_v57  ;;  %v832_v5 = vsub.f32 1.0, %v831_v62  ;;  %v567_v20 = vsel %vm3111_vm14, %v566_v16, %v562_v6  ;;  %vm576_vm7 = vmor %vm574_vm5, %vm575_vm3  ;;  %v604_v43 = vperm.slane %v3102_v46, 5 }
 0x165   : > { %v571_v7 = vsub.f32 1.0, %v570_v1  ;;  %v828_v18 = vsel %vm825_vm1, %v827_v8, %v823_v23  ;;  %v568_v32 = vmul.f32 %v567_v20, %v526_v61  ;;  %v2796_v1 = vmov 0  }
 0x166   : > { %v833_v12 = vmul.f32 %v2433_v55, %v832_v5  ;;  %v829_v28 = vmul.f32 %v828_v18, %v787_v60  ;;  %v963_v4 = vsel %vm962_vm11, 1, %v2796_v1  ;;  %vm1249_vm14 = vcmask 523264  }
 0x167   : > { %v572_v14 = vmul.f32 %v2435_v59, %v571_v7  ;;  %v585_v37 = vadd.f32 %v584_v25, %v568_v32  ;;  %v964_v15 = vperm.slane %v963_v4, 0  ;;  %vm1252_vm15 = vcmask 785408  }
 0x168   : > { %v834_v21 = vadd.f32 %v2433_v55, %v833_v12  ;;  %v846_v36 = vadd.f32 %v829_v28, %v584_v25 }
 0x169   : > { %v573_v22 = vadd.f32 %v2435_v59, %v572_v14  ;;  %vm3149_vm12 = vcmp.eq.s32.totalorder %v964_v15, 1 }
 0x16a   : > { %v838_v29 = vsel %vm837_vm6, %v2433_v55, %v834_v21  ;;  %v865_v55 = vperm.slane %v3102_v46, 4 }
 0x16b   : > { %v577_v24 = vsel %vm576_vm7, %v2435_v59, %v573_v22  ;;  %v843_v33 = vsel %vm840_vm8, %v842_v26, %v838_v29 }
 0x16c   : > { %v582_v34 = vsel %vm579_vm9, %v581_v27, %v577_v24  ;;  %v844_v2 = vmul.f32 %v843_v33, %v788_v63 }
 0x16d   : > { %v583_v35 = vmul.f32 %v582_v34, %v527_v19 }
 0x16e   : > { %v847_v3 = vadd.f32 %v844_v2, %v584_v25 }
 0x16f   : > { %v586_v38 = vadd.f32 %v584_v25, %v583_v35 }
 0x170   : > { %v848_v39 = vpack.c.bf16 %v847_v3, %v846_v36 }
 0x171   : > { %v587_v40 = vpack.c.bf16 %v586_v38, %v585_v37 }
 0x172   : > { %922 = vmatmul.bf16.vlgmr.msra.gmra.mxu2 %v848_v39 }
 0x173   : > { %661 = vmatmul.bf16.vlgmr.msra.gmra.mxu0 %v587_v40  ;;  %740 = vmatmul.bf16.vlgmr.msra.gmra.mxu1 %v587_v40 }
 0x1f0   : > { %v662_v41 = vpop.f32.mrf.mxu0  ;;  %v741_v42 = vpop.f32.mrf.mxu1 }
 0x1f1   : > { %v663_v30 = vadd.f32 %v662_v41, %v604_v43  ;;  %v742_v31 = vadd.f32 %v741_v42, %v683_v44 }
 0x1f5   : > { %v923_v45 = vpop.f32.mrf.mxu2 }
 0x1f6   : > { %v924_v58 = vadd.f32 %v923_v45, %v865_v55 }
 0x1f8   : > { %v664_v47 = vpop.f32.mrf.mxu0  ;;  %v743_v48 = vpop.f32.mrf.mxu1  ;;  %v928_v62 = vmul.f32 0.17677669, %v924_v58 }
 0x1f9   : > { %v665_v50 = vadd.f32 %v664_v47, %v604_v43  ;;  %v744_v51 = vadd.f32 %v743_v48, %v683_v44 }
 0x1fb   : > { %v2266_v52 = vpack.c.bf16 %v665_v50, %v663_v30  ;;  %v2271_v53 = vpack.c.bf16 %v744_v51, %v742_v31 }
 0x1fd   : > { %2267 = vst [vmem:[#allocation2] sm:$0xff] %v2266_v52   ;;  %v925_v54 = vpop.f32.mrf.mxu2 }
 0x1fe   : > { %2272 = vst [vmem:[#allocation3] sm:$0xff] %v2271_v53   ;;  %v926_v56 = vadd.f32 %v925_v54, %v865_v55 }
 0x200   : > { %v929_v61 = vmul.f32 0.17677669, %v926_v56 }
 0x202   : > { %v935_v63 = vpack.c.bf16 %v929_v61, %v928_v62 }
 0x204   : > { %v2220_v57 = vld [vmem:[#allocation2] sm:$0xff] }
 0x205   : > { %v946_v59 = vsel %vm941_vm10, %v2220_v57, 0  ;;  %v3143_v60 = vld [vmem:[#allocation3] sm:$0xff] }
 0x206   : > { %955 = vmatpush.bf16.xpose.msra.mxu3 %v946_v59 }
 0x20d   : > { %2017 = vmatmul.msk.bf16.vlgmr.msra.gmra.mxu3 %vm941_vm10, %v935_v63 }
 0x20e   : > { %1008 = vmatpush.bf16.msrb.mxu3 %v3143_v60 }
 0x290   : > { %v957_v23 = vpop.f32.mrf.mxu3 }
 0x291   : > { %v966_v5 = vsel %vm3149_vm12, %v957_v23, -1e+09 }
 0x292   : > { %v969_v6 = vsel %vm968_vm13, %v966_v5, -inf }
 0x293   : > { %970 = vmax.xlane.f32.xlu2 %v969_v6 }
 0x298   : > { %v959_v7 = vpop.f32.mrf.mxu3 }
 0x299   : > { %v967_v8 = vsel %vm3149_vm12, %v959_v7, -1e+09 }
 0x29a   : > { %v972_v9 = vsel %vm968_vm13, %v967_v8, -inf }
 0x29b   : > { %973 = vmax.xlane.f32.xlu0 %v972_v9 }
 0x2ab   : > { %1087 = vrot.lane.b32.xlu2 %v2220_v57, %s2797_s11 }
 0x2af   : > { %1018 = vrot.lane.b32.xlu0 %v2220_v57, %s2798_s13 }
 0x2b7   : > { %1156 = vrot.lane.b32.xlu0 %v2220_v57, %s2799_s3 }
 0x306   : > { %v971_v11 = vpop.xlane.xlu2 %970 }
 0x307   : > { %v975_v12 = vsub.f32 %v966_v5, %v971_v11 }
 0x309   : > { %v977_v13 = vmul.f32 1.442695, %v975_v12 }
 0x30b   : > { %2436 = vpow2.f32 %v977_v13 }
 0x30e   : > { %v1088_v14 = vpop.permute.xlu2 %1087  ;;  %v974_v17 = vpop.xlane.xlu0 %973 }
 0x30f   : > { %v976_v18 = vsub.f32 %v967_v8, %v974_v17  ;;  %v1093_v19 = vsel %vm941_vm10, %v1088_v14, 0 }
 0x310   : > { %1102 = vmatpush.bf16.xpose.msrb.mxu2 %v1093_v19 }
 0x311   : > { %v2437_v20 = vpop.eup %2436  ;;  %v979_v21 = vmul.f32 1.442695, %v976_v18 }
 0x312   : > { %v981_v22 = vsel %vm968_vm13, %v2437_v20, 0.0 }
 0x313   : > { %2438 = vpow2.f32 %v979_v21  ;;  %982 = vadd.xlane.f32.xlu1 %v981_v22 }
 0x319   : > { %v2439_v25 = vpop.eup %2438 }
 0x31a   : > { %v984_v26 = vsel %vm968_vm13, %v2439_v25, 0.0 }
 0x31b   : > { %985 = vadd.xlane.f32.xlu2 %v984_v26 }
 0x321   : > { %v1019_v27 = vpop.permute.xlu0 %1018 }
 0x322   : > { %v1024_v28 = vsel %vm941_vm10, %v1019_v27, 0 }
 0x323   : > { %1033 = vmatpush.bf16.xpose.msra.mxu3 %v1024_v28 }
 0x329   : > { %v1157_v36 = vpop.permute.xlu0 %1156 }
 0x32a   : > { %v1162_v37 = vsel %vm941_vm10, %v1157_v36, 0 }
 0x32c   : > { %1016 = vrot.lane.b32.xlu1 %v935_v63, %s2798_s13 }
 0x333   : > { %1085 = vrot.lane.b32.xlu2 %v935_v63, %s2797_s11 }
 0x334   : > { %1154 = vrot.lane.b32.xlu1 %v935_v63, %s2799_s3 }
 0x386   : > { %v983_v29 = vpop.xlane.xlu1 %982 }
 0x387   : > { %2440 = vrcp.f32 %v983_v29 }
 0x38d   : > { %v2441_v24 = vpop.eup %2440 }
 0x38e   : > { %v986_v32 = vpop.xlane.xlu2 %985  ;;  %v989_v34 = vmul.f32 %v2441_v24, %v2437_v20 }
 0x38f   : > { %2442 = vrcp.f32 %v986_v32 }
 0x395   : > { %v2443_v33 = vpop.eup %2442 }
 0x396   : > { %v990_v2 = vmul.f32 %v2443_v33, %v2439_v25  ;;  %v1086_v35 = vpop.permute.xlu2 %1085 }
 0x397   : > { %2025 = vmatmul.msk.bf16.vlgmr.msrb.gmra.mxu2 %vm941_vm10, %v1086_v35 }
 0x398   : > { %v991_v3 = vpack.c.bf16 %v990_v2, %v989_v34 }
 0x39a   : > { %2022 = vmatmul.msk.bf16.vlgmr.msrb.gmra.mxu3 %vm968_vm13, %v991_v3 }
 0x39b   : > { %1171 = vmatpush.bf16.xpose.msrb.mxu3 %v1162_v37 }
 0x39e   : > { %v1017_v38 = vpop.permute.xlu1 %1016 }
 0x3a6   : > { %v1155_v39 = vpop.permute.xlu1 %1154 }
 0x3aa   : > { %2023 = vmatmul.msk.bf16.vlgmr.msra.gmra.mxu3 %vm941_vm10, %v1017_v38 }
 0x3ba   : > { %2027 = vmatmul.msk.bf16.vlgmr.msrb.gmra.mxu3 %vm941_vm10, %v1155_v39 }
 0x41a   : > { %v1104_v40 = vpop.f32.mrf.mxu2 }
 0x41b   : > { %v1109_v41 = vsel %vm3149_vm12, %v1104_v40, -1e+09 }
 0x41c   : > { %v1111_v42 = vsel %vm968_vm13, %v1109_v41, -inf }
 0x41d   : > { %v3177_v43 = vpop.f32.mrf.mxu3  ;;  %1112 = vmax.xlane.f32.xlu1 %v1111_v42 }
 0x422   : > { %v1106_v30 = vpop.f32.mrf.mxu2 }
 0x423   : > { %v1110_v31 = vsel %vm3149_vm12, %v1106_v30, -1e+09 }
 0x424   : > { %v1114_v52 = vsel %vm968_vm13, %v1110_v31, -inf }
 0x425   : > { %v3179_v44 = vpop.f32.mrf.mxu3 }
 0x42d   : > { %v1035_v45 = vpop.f32.mrf.mxu3 }
 0x42e   : > { %v1040_v47 = vsel %vm3149_vm12, %v1035_v45, -1e+09 }
 0x42f   : > { %v1042_v48 = vsel %vm968_vm13, %v1040_v47, -inf }
 0x430   : > { %1043 = vmax.xlane.f32.xlu0 %v1042_v48 }
 0x435   : > { %v1037_v50 = vpop.f32.mrf.mxu3 }
 0x436   : > { %v1041_v51 = vsel %vm3149_vm12, %v1037_v50, -1e+09 }
 0x437   : > { %v1045_v53 = vsel %vm968_vm13, %v1041_v51, -inf }
 0x438   : > { %1115 = vmax.xlane.f32.xlu0 %v1114_v52  ;;  %1046 = vmax.xlane.f32.xlu2 %v1045_v53 }
 0x43d   : > { %v1173_v54 = vpop.f32.mrf.mxu3 }
 0x43e   : > { %v1178_v55 = vsel %vm3149_vm12, %v1173_v54, -1e+09 }
 0x43f   : > { %v1180_v56 = vsel %vm968_vm13, %v1178_v55, -inf }
 0x440   : > { %1181 = vmax.xlane.f32.xlu2 %v1180_v56  ;;  %v2229_v56 = vld [vmem:[#allocation12 + $0xf8] sm:$0xf0] }
 0x445   : > { %v1175_v57 = vpop.f32.mrf.mxu3 }
 0x446   : > { %v1179_v58 = vsel %vm3149_vm12, %v1175_v57, -1e+09  ;;  %v2055_v57 = vld [vmem:[#allocation12 + $0xcc] sm:$0xf] }
 0x447   : > { %v1183_v59 = vsel %vm968_vm13, %v1179_v58, -inf }
 0x448   : > { %1184 = vmax.xlane.f32.xlu1 %v1183_v59  ;;  %v2228_v59 = vld [vmem:[#allocation12 + $0xd8] sm:$0xf0] }
 0x461   : > { %1065 = vrot.lane.b32.xlu1 %v3143_v60, %s2798_s13 }
 0x490   : > { %v1113_v61 = vpop.xlane.xlu1 %1112 }
 0x491   : > { %v1117_v62 = vsub.f32 %v1109_v41, %v1113_v61  ;;  %v2056_v61 = vor.u32 %v2228_v59, %v2055_v57 }
 0x493   : > { %v1119_v63 = vmul.f32 1.442695, %v1117_v62 }
 0x495   : > { %2444 = vpow2.f32 %v1119_v63 }
 0x49b   : > { %v3198_v0 = vpop.eup %2444 }
 0x49c   : > { %v1123_v1 = vsel %vm968_vm13, %v3198_v0, 0.0 }
 0x49d   : > { %1124 = vadd.xlane.f32.xlu0 %v1123_v1 }
 0x4a3   : > { %v1044_v4 = vpop.xlane.xlu0 %1043 }
 0x4a4   : > { %v1048_v15 = vsub.f32 %v1040_v47, %v1044_v4 }
 0x4a6   : > { %v1050_v16 = vmul.f32 1.442695, %v1048_v15 }
 0x4a8   : > { %2446 = vpow2.f32 %v1050_v16 }
 0x4ab   : > { %v1047_v23 = vpop.xlane.xlu2 %1046  ;;  %v1116_v5 = vpop.xlane.xlu0 %1115 }
 0x4ac   : > { %v1118_v6 = vsub.f32 %v1110_v31, %v1116_v5  ;;  %v1049_v9 = vsub.f32 %v1041_v51, %v1047_v23 }
 0x4ae   : > { %v2447_v7 = vpop.eup %2446  ;;  %v1121_v8 = vmul.f32 1.442695, %v1118_v6  ;;  %v1052_v12 = vmul.f32 1.442695, %v1049_v9  ;;  %v2051_v6 = vld [vmem:[#allocation12 + $0xac] sm:$0xf] }
 0x4af   : > { %v1054_v11 = vsel %vm968_vm13, %v2447_v7, 0.0 }
 0x4b0   : > { %1055 = vadd.xlane.f32.xlu0 %v1054_v11  ;;  %2448 = vpow2.f32 %v1121_v8  ;;  %v2047_v8 = vld [vmem:[#allocation12 + $0x8c] sm:$0xf]  ;;  %v2226_v11 = vld [vmem:[#allocation12 + $0x98] sm:$0xf0] }
 0x4b1   : > { %2450 = vpow2.f32 %v1052_v12  ;;  %v2048_v12 = vor.u32 %v2226_v11, %v2047_v8  ;;  %v2241_v11 = vld [vmem:[#allocation13 + $0x54] sm:$0xf0] }
 0x4b3   : > { %v1182_v13 = vpop.xlane.xlu2 %1181 }
 0x4b4   : > { %v1186_v14 = vsub.f32 %v1178_v55, %v1182_v13  ;;  %v2059_v55 = vld [vmem:[#allocation12 + $0xec] sm:$0xf] }
 0x4b5   : > { %v2043_v13 = vld [vmem:[#allocation12 + $0x6c] sm:$0xf] }
 0x4b6   : > { %v1188_v17 = vmul.f32 1.442695, %v1186_v14  ;;  %v2449_v18 = vpop.eup %2448  ;;  %v2225_v14 = vld [vmem:[#allocation12 + $0x78] sm:$0xf0] }
 0x4b7   : > { %v1126_v19 = vsel %vm968_vm13, %v2449_v18, 0.0  ;;  %v2451_v22 = vpop.eup %2450 }
 0x4b8   : > { %2452 = vpow2.f32 %v1188_v17  ;;  %1127 = vadd.xlane.f32.xlu2 %v1126_v19  ;;  %v1057_v28 = vsel %vm968_vm13, %v2451_v22, 0.0  ;;  %v2044_v17 = vor.u32 %v2225_v14, %v2043_v13  ;;  %v2224_v19 = vld [vmem:[#allocation12 + $0x58] sm:$0xf0] }
 0x4b9   : > { %v2105_v13 = vld [vmem:[#allocation13 + $0x58] sm:$0xf0] }
 0x4bb   : > { %v1185_v20 = vpop.xlane.xlu1 %1184 }
 0x4bc   : > { %v1187_v21 = vsub.f32 %v1179_v58, %v1185_v20  ;;  %v2060_v58 = vor.u32 %v2229_v56, %v2059_v55 }
 0x4be   : > { %v2453_v25 = vpop.eup %2452  ;;  %v1190_v26 = vmul.f32 1.442695, %v1187_v21  ;;  %1321 = vmatpush.bf16.msrb.mxu1 %v2060_v58  ;;  %v2035_v21 = vld [vmem:[#allocation12 + $0x2c] sm:$0xf] }
 0x4bf   : > { %v1192_v27 = vsel %vm968_vm13, %v2453_v25, 0.0 }
 0x4c0   : > { %2454 = vpow2.f32 %v1190_v26  ;;  %1193 = vadd.xlane.f32.xlu0 %v1192_v27  ;;  %1058 = vadd.xlane.f32.xlu2 %v1057_v28  ;;  %v2031_v26 = vld [vmem:[#allocation12 + $0xc] sm:$0xf]  ;;  %v2222_v27 = vld [vmem:[#allocation12 + $0x18] sm:$0xf0] }
 0x4c1   : > { %v2032_v28 = vor.u32 %v2222_v27, %v2031_v26  ;;  %v2097_v26 = vld [vmem:[#allocation13 + $0x48] sm:$0xf0] }
 0x4c2   : > { %1322 = vmatpush.bf16.msrb.mxu1 %v2056_v61 }
 0x4c6   : > { %v2455_v29 = vpop.eup %2454 }
 0x4c7   : > { %v1195_v32 = vsel %vm968_vm13, %v2455_v29, 0.0 }
 0x4c8   : > { %1196 = vadd.xlane.f32.xlu2 %v1195_v32 }
 0x4d3   : > { %v1066_v24 = vpop.permute.xlu1 %1065 }
 0x4d4   : > { %1078 = vmatpush.bf16.msrb.mxu0 %v1066_v24  ;;  %1134 = vrot.lane.b32.xlu0 %v3143_v60, %s2797_s11 }
 0x4e0   : > { %1203 = vrot.lane.b32.xlu2 %v3143_v60, %s2799_s3 }
 0x510   : > { %v1125_v33 = vpop.xlane.xlu0 %1124 }
 0x523   : > { %v1056_v2 = vpop.xlane.xlu0 %1055 }
 0x524   : > { %2456 = vrcp.f32 %v1056_v2 }
 0x52a   : > { %v2457_v36 = vpop.eup %2456 }
 0x52b   : > { %v1128_v34 = vpop.xlane.xlu2 %1127  ;;  %v1062_v37 = vmul.f32 %v2457_v36, %v2447_v7  ;;  %v2227_v7 = vld [vmem:[#allocation12 + $0xb8] sm:$0xf0] }
 0x52c   : > { %v2052_v9 = vor.u32 %v2227_v7, %v2051_v6  ;;  %v2113_v6 = vld [vmem:[#allocation13 + $0x68] sm:$0xf0] }
 0x52e   : > { %1323 = vmatpush.bf16.msrb.mxu1 %v2052_v9  ;;  %v2103_v9 = vld [vmem:[#allocation13 + $0x50] sm:$0xf] }
 0x52f   : > { %v2104_v14 = vor.u32 %v2241_v11, %v2103_v9  ;;  %v2260_v9 = vld [vmem:[#allocation15 + $0x70] sm:$0xff] }
 0x532   : > { %1324 = vmatpush.bf16.msrb.mxu1 %v2048_v12  ;;  %v2240_v12 = vld [vmem:[#allocation13 + $0x54] sm:$0xf] }
 0x533   : > { %v1059_v35 = vpop.xlane.xlu2 %1058  ;;  %v1194_v40 = vpop.xlane.xlu0 %1193 }
 0x534   : > { %2458 = vrcp.f32 %v1059_v35 }
 0x535   : > { %2460 = vrcp.f32 %v1128_v34 }
 0x536   : > { %2462 = vrcp.f32 %v1125_v33  ;;  %1325 = vmatpush.bf16.msrb.mxu1 %v2044_v17 }
 0x53a   : > { %v2459_v3 = vpop.eup %2458 }
 0x53b   : > { %v1063_v38 = vmul.f32 %v2459_v3, %v2451_v22  ;;  %v1197_v39 = vpop.xlane.xlu2 %1196  ;;  %v2461_v42 = vpop.eup %2460  ;;  %v2223_v22 = vld [vmem:[#allocation12 + $0x38] sm:$0xf0] }
 0x53c   : > { %2464 = vrcp.f32 %v1197_v39  ;;  %v2463_v60 = vpop.eup %2462  ;;  %v1132_v45 = vmul.f32 %v2461_v42, %v2449_v18  ;;  %v2039_v18 = vld [vmem:[#allocation12 + $0x4c] sm:$0xf] }
 0x53d   : > { %v1064_v41 = vpack.c.bf16 %v1063_v38, %v1062_v37  ;;  %2466 = vrcp.f32 %v1194_v40  ;;  %v1131_v48 = vmul.f32 %v2463_v60, %v3198_v0  ;;  %v2040_v20 = vor.u32 %v2224_v19, %v2039_v18  ;;  %v2095_v19 = vld [vmem:[#allocation13 + $0x40] sm:$0xf] }
 0x53e   : > { %v2108_v18 = vor.u32 %v2240_v12, %v2105_v13 }
 0x53f   : > { %2024 = vmatmul.msk.bf16.vlgmr.msrb.gmra.mxu0 %vm968_vm13, %v1064_v41  ;;  %v1133_v50 = vpack.c.bf16 %v1132_v45, %v1131_v48  ;;  %1326 = vmatpush.bf16.msrb.mxu1 %v2040_v20  ;;  %v1272_v45 = vperm.slane %v3102_v46, 7  ;;  %v2239_v20 = vld [vmem:[#allocation13 + $0x44] sm:$0xf0] }
 0x542   : > { %v2465_v31 = vpop.eup %2464 }
 0x543   : > { %v1204_v47 = vpop.permute.xlu2 %1203  ;;  %v2467_v51 = vpop.eup %2466  ;;  %v1201_v52 = vmul.f32 %v2465_v31, %v2455_v29 }
 0x544   : > { %1216 = vmatpush.bf16.msra.mxu0 %v1204_v47  ;;  %v1200_v53 = vmul.f32 %v2467_v51, %v2453_v25  ;;  %v2036_v25 = vor.u32 %v2223_v22, %v2035_v21 }
 0x546   : > { %v1135_v30 = vpop.permute.xlu0 %1134  ;;  %v1202_v54 = vpack.c.bf16 %v1201_v52, %v1200_v53  ;;  %1327 = vmatpush.bf16.msrb.mxu1 %v2036_v25  ;;  %v2238_v25 = vld [vmem:[#allocation13 + $0x44] sm:$0xf] }
 0x547   : > { %1147 = vmatpush.bf16.msra.mxu2 %v1135_v30  ;;  %v2476_v30 = vld [vmem:[%s3011_s19] sm:$0xff] }
 0x54a   : > { %2026 = vmatmul.msk.bf16.vlgmr.msra.gmra.mxu2 %vm968_vm13, %v1133_v50  ;;  %1328 = vmatpush.bf16.msrb.mxu1 %v2032_v28  ;;  %v2477_v50 = vld [vmem:[%s3011_s19 + $0x8] sm:$0xff]  ;;  %v2096_v28 = vor.u32 %v2239_v20, %v2095_v19  ;;  %s2702_s19 = sshra.s32 %s1731_s1, 4  ;;  %s2703_s19 = int_to_ptr.hbm [resolvable:$true] %s2702_s19 }
 0x54b   : > { %v2259_v19 = vld [vmem:[#allocation15 + $0x68] sm:$0xff]  ;;  %s2704_s4 = scalar_lea.hbm %s2703_s19, 16  ;;  %p2709_p8 = scmp.lt.s32.totalorder %s2703_s19, %s3366_s23 }
 0x54c   : > { %p2705_p1 = scmp.ne.s32.totalorder %s2703_s19, %s2704_s4  ;;  %p2710_p10 = scmp.lt.s32.totalorder %s2708_s22, %s2704_s4 }
 0x54e   : > { %p2706_p2 = pnand %p2705_p1, %p2936_p7  ;;  %p2711_p11 = por %p2710_p10, %p2709_p8 }
 0x54f   : > { %2028 = vmatmul.msk.bf16.vlgmr.msra.gmra.mxu0 %vm968_vm13, %v1202_v54 }
 0x550   : > { %p2707_p4 = pneg %p2706_p2 }
 0x552   : > { %p2712_p12 = pnand %p2711_p11, %p2707_p4 }
 0x5bc   : > { %v1080_v62 = vpop.f32.mrf.mxu0 }
 0x5c4   : > { %v1082_v63 = vpop.f32.mrf.mxu0 }
 0x5c5   : > { %v2400_v0 = vpack.i.bf16 %v1082_v63, %v1080_v62  ;;  %v2119_v62 = vld [vmem:[#allocation13 + $0x70] sm:$0xf]  ;;  %v2245_v63 = vld [vmem:[#allocation13 + $0x74] sm:$0xf0] }
 0x5c7   : > { %2401 = vrot.lane.b32.xlu1 %v2400_v0, %s2799_s3  ;;  %v2244_v0 = vld [vmem:[#allocation13 + $0x74] sm:$0xf] }
 0x5cc   : > { %v1218_v1 = vpop.f32.mrf.mxu0 }
 0x5cd   : > { %v1149_v4 = vpop.f32.mrf.mxu2 }
 0x5d4   : > { %v1220_v15 = vpop.f32.mrf.mxu0 }
 0x5d5   : > { %v1151_v16 = vpop.f32.mrf.mxu2  ;;  %v2410_v23 = vpack.i.bf16 %v1220_v15, %v1218_v1  ;;  %v2121_v15 = vld [vmem:[#allocation13 + $0x78] sm:$0xf0] }
 0x5d6   : > { %v2405_v5 = vpack.i.bf16 %v1151_v16, %v1149_v4  ;;  %v2120_v4 = vor.u32 %v2245_v63, %v2119_v62  ;;  %v2124_v16 = vor.u32 %v2244_v0, %v2121_v15  ;;  %v2231_v62 = vld [vmem:[#allocation13 + $0x4] sm:$0xf0]  ;;  %v2230_v15 = vld [vmem:[#allocation13 + $0x4] sm:$0xf] }
 0x5d7   : > { %2411 = vrot.lane.b32.xlu0 %v2410_v23, %s2798_s13  ;;  %v2111_v23 = vld [vmem:[#allocation13 + $0x60] sm:$0xf] }
 0x5d8   : > { %2406 = vrot.lane.b32.xlu1 %v2405_v5, %s2797_s11  ;;  %v2243_v5 = vld [vmem:[#allocation13 + $0x64] sm:$0xf0]  ;;  %1518 = vmatpush.bf16.msrb.mxu2 %v2120_v4 }
 0x5d9   : > { %1532 = vmatpush.bf16.msra.mxu3 %v2124_v16  ;;  %v2112_v7 = vor.u32 %v2243_v5, %v2111_v23  ;;  %v2065_v16 = vld [vmem:[#allocation13 + $0x8] sm:$0xf0]  ;;  %v2253_v23 = vld [vmem:[#allocation15 + $0x38] sm:$0xff] }
 0x5da   : > { %v2261_v5 = vld [vmem:[#allocation15 + $0x78] sm:$0xff]  ;;  %1681 = vmatpush.bf16.msrb.mxu0 %v2253_v23 }
 0x5db   : > { %1695 = vmatpush.bf16.msra.mxu1 %v2261_v5 }
 0x5dc   : > { %1519 = vmatpush.bf16.msrb.mxu2 %v2112_v7 }
 0x5df   : > { %1696 = vmatpush.bf16.msra.mxu1 %v2260_v9 }
 0x5e0   : > { %1520 = vmatpush.bf16.msrb.mxu2 %v2104_v14  ;;  %v2251_v14 = vld [vmem:[#allocation15 + $0x28] sm:$0xff] }
 0x5e3   : > { %1697 = vmatpush.bf16.msra.mxu1 %v2259_v19 }
 0x5e4   : > { %1521 = vmatpush.bf16.msrb.mxu2 %v2096_v28 }
 0x639   : > { %v2402_v29 = vpop.permute.xlu1 %2401 }
 0x63a   : > { %v2404_v32 = vunpack.i.h.bf16 %v2402_v29  ;;  %v2403_v24 = vunpack.i.l.bf16 %v2402_v29 }
 0x63c   : > { %v1248_v36 = vsel %vm941_vm10, %v3179_v44, %v2404_v32  ;;  %v1247_v3 = vsel %vm941_vm10, %v3177_v43, %v2403_v24  ;;  %v2100_v32 = vor.u32 %v2238_v25, %v2097_v26  ;;  %v2087_v24 = vld [vmem:[#allocation13 + $0x30] sm:$0xf]  ;;  %v2250_v25 = vld [vmem:[#allocation15 + $0x20] sm:$0xff] }
 0x63d   : > { %v2258_v26 = vld [vmem:[#allocation15 + $0x60] sm:$0xff] }
 0x63e   : > { %1698 = vmatpush.bf16.msra.mxu1 %v2258_v26 }
 0x649   : > { %v2412_v33 = vpop.permute.xlu0 %2411 }
 0x64a   : > { %v2407_v34 = vpop.permute.xlu1 %2406  ;;  %v2414_v37 = vunpack.i.h.bf16 %v2412_v33  ;;  %v2413_v38 = vunpack.i.l.bf16 %v2412_v33  ;;  %v2237_v33 = vld [vmem:[#allocation13 + $0x34] sm:$0xf0] }
 0x64b   : > { %v2409_v2 = vunpack.i.h.bf16 %v2407_v34  ;;  %v2408_v35 = vunpack.i.l.bf16 %v2407_v34  ;;  %v2236_v34 = vld [vmem:[#allocation13 + $0x34] sm:$0xf] }
 0x64d   : > { %v1251_v39 = vsel %vm1249_vm14, %v1248_v36, %v2409_v2  ;;  %v1250_v40 = vsel %vm1249_vm14, %v1247_v3, %v2408_v35  ;;  %v2089_v2 = vld [vmem:[#allocation13 + $0x38] sm:$0xf0]  ;;  %v2088_v36 = vor.u32 %v2237_v33, %v2087_v24  ;;  %v1353_v33 = vperm.slane %v3102_v46, 2 }
 0x64e   : > { %v1253_v41 = vsel %vm1252_vm15, %v1250_v40, %v2413_v38  ;;  %v1254_v42 = vsel %vm1252_vm15, %v1251_v39, %v2414_v37  ;;  %v2092_v3 = vor.u32 %v2236_v34, %v2089_v2  ;;  %v2079_v37 = vld [vmem:[#allocation13 + $0x20] sm:$0xf]  ;;  %v2235_v38 = vld [vmem:[#allocation13 + $0x24] sm:$0xf0]  ;;  %v2234_v40 = vld [vmem:[#allocation13 + $0x24] sm:$0xf] }
 0x64f   : > { %v1255_v60 = vpack.c.bf16 %v1254_v42, %v1253_v41  ;;  %v2081_v41 = vld [vmem:[#allocation13 + $0x28] sm:$0xf0]  ;;  %1522 = vmatpush.bf16.msrb.mxu2 %v2088_v36 }
 0x651   : > { %1329 = vmatmul.bf16.vlgmr.msrb.gmra.mxu1 %v1255_v60 }
 0x6ce   : > { %v1330_v47 = vpop.f32.mrf.mxu1 }
 0x6cf   : > { %v1331_v48 = vadd.f32 %v1330_v47, %v1272_v45 }
 0x6d1   : > { %v3224_v31 = vadd.f32 %v2476_v30, %v1331_v48  ;;  %v2084_v30 = vor.u32 %v2234_v40, %v2081_v41 }
 0x6d3   : > { %1337 = vadd.xlane.f32.xlu1 %v3224_v31 }
 0x6d6   : > { %v1332_v44 = vpop.f32.mrf.mxu1 }
 0x6d7   : > { %v1333_v43 = vadd.f32 %v1332_v44, %v1272_v45  ;;  %v2080_v45 = vor.u32 %v2235_v38, %v2079_v37  ;;  %v2071_v44 = vld [vmem:[#allocation13 + $0x10] sm:$0xf] }
 0x6d9   : > { %v3228_v51 = vadd.f32 %v2477_v50, %v1333_v43  ;;  %v2233_v43 = vld [vmem:[#allocation13 + $0x14] sm:$0xf0]  ;;  %1523 = vmatpush.bf16.msrb.mxu2 %v2080_v45  ;;  %v1412_v45 = vperm.slane %v3102_v46, 3  ;;  %v2246_v46 = vld [vmem:[#allocation15] sm:$0xff] }
 0x6db   : > { %1339 = vadd.xlane.f32.xlu2 %v3228_v51 }
 0x746   : > { %v1338_v52 = vpop.xlane.xlu1 %1337 }
 0x747   : > { %v1341_v53 = vmul.f32 %v1338_v52, %v3034_v10  ;;  %v2232_v52 = vld [vmem:[#allocation13 + $0x14] sm:$0xf] }
 0x749   : > { %v3233_v54 = vsub.f32 %v3224_v31, %v1341_v53  ;;  %v2073_v53 = vld [vmem:[#allocation13 + $0x18] sm:$0xf0] }
 0x74a   : > { %v2076_v4 = vor.u32 %v2232_v52, %v2073_v53  ;;  %v2248_v52 = vld [vmem:[#allocation15 + $0x10] sm:$0xff]  ;;  %v2247_v53 = vld [vmem:[#allocation15 + $0x8] sm:$0xff] }
 0x74b   : > { %v1345_v55 = vmul.f32 %v3233_v54, %v3233_v54  ;;  %v1354_v38 = vmul.f32 %v1353_v33, %v3233_v54  ;;  %v2257_v54 = vld [vmem:[#allocation15 + $0x58] sm:$0xff] }
 0x74c   : > { %1699 = vmatpush.bf16.msra.mxu1 %v2257_v54 }
 0x74d   : > { %1347 = vadd.xlane.f32.xlu0 %v1345_v55 }
 0x74e   : > { %v1340_v56 = vpop.xlane.xlu2 %1339 }
 0x74f   : > { %v1342_v57 = vmul.f32 %v1340_v56, %v3034_v10  ;;  %v2242_v10 = vld [vmem:[#allocation13 + $0x64] sm:$0xf] }
 0x750   : > { %v2116_v8 = vor.u32 %v2242_v10, %v2113_v6 }
 0x751   : > { %v3239_v58 = vsub.f32 %v3228_v51, %v1342_v57 }
 0x752   : > { %1533 = vmatpush.bf16.msra.mxu3 %v2116_v8  ;;  %v2068_v8 = vor.u32 %v2230_v15, %v2065_v16 }
 0x753   : > { %v1346_v59 = vmul.f32 %v3239_v58, %v3239_v58  ;;  %v1355_v40 = vmul.f32 %v1353_v33, %v3239_v58  ;;  %v2256_v58 = vld [vmem:[#allocation15 + $0x50] sm:$0xff] }
 0x754   : > { %1700 = vmatpush.bf16.msra.mxu1 %v2256_v58 }
 0x755   : > { %1349 = vadd.xlane.f32.xlu1 %v1346_v59  ;;  %v2072_v59 = vor.u32 %v2233_v43, %v2071_v44 }
 0x756   : > { %1534 = vmatpush.bf16.msra.mxu3 %v2108_v18 }
 0x757   : > { %1524 = vmatpush.bf16.msrb.mxu2 %v2072_v59 }
 0x75a   : > { %1535 = vmatpush.bf16.msra.mxu3 %v2100_v32 }
 0x75e   : > { %1536 = vmatpush.bf16.msra.mxu3 %v2092_v3 }
 0x762   : > { %1537 = vmatpush.bf16.msra.mxu3 %v2084_v30 }
 0x766   : > { %1538 = vmatpush.bf16.msra.mxu3 %v2076_v4 }
 0x76a   : > { %1539 = vmatpush.bf16.msra.mxu3 %v2068_v8 }
 0x7c0   : > { %v1348_v61 = vpop.xlane.xlu0 %1347 }
 0x7c1   : > { %v3244_v1 = vmul.f32 %v1348_v61, %v3056_v49  ;;  %v2063_v61 = vld [vmem:[#allocation13] sm:$0xf] }
 0x7c2   : > { %v2064_v6 = vor.u32 %v2231_v62, %v2063_v61 }
 0x7c3   : > { %2468 = vrsqrt.f32 %v3244_v1  ;;  %vm1363_vm0 = vcmp.eq.f32.partialorder %v3244_v1, inf  ;;  %v1366_v50 = vand.u32 2147483648, %v3244_v1  ;;  %vm1365_vm1 = vcmp.eq.f32.partialorder %v3244_v1, 0.0 }
 0x7c4   : > { %1525 = vmatpush.bf16.msrb.mxu2 %v2064_v6 }
 0x7c8   : > { %v1350_v17 = vpop.xlane.xlu1 %1349 }
 0x7c9   : > { %v2469_v21 = vpop.eup %2468  ;;  %v3248_v22 = vmul.f32 %v1350_v17, %v3056_v49 }
 0x7ca   : > { %v1357_v27 = vmul.f32 %v2469_v21, %v3244_v1 }
 0x7cb   : > { %2470 = vrsqrt.f32 %v3248_v22  ;;  %vm1375_vm2 = vcmp.eq.f32.partialorder %v3248_v22, inf  ;;  %v1378_v11 = vand.u32 2147483648, %v3248_v22  ;;  %vm1377_vm3 = vcmp.eq.f32.partialorder %v3248_v22, 0.0 }
 0x7cc   : > { %v1358_v29 = vmul.f32 %v2469_v21, %v1357_v27 }
 0x7ce   : > { %v1359_v35 = vmul.f32 0.5, %v1358_v29 }
 0x7d0   : > { %v1360_v49 = vsub.f32 1.5, %v1359_v35 }
 0x7d1   : > { %v2471_v39 = vpop.eup %2470 }
 0x7d2   : > { %v1361_v42 = vmul.f32 %v2469_v21, %v1360_v49  ;;  %v1369_v60 = vmul.f32 %v2471_v39, %v3248_v22 }
 0x7d4   : > { %v1362_v47 = vmul.f32 %v1361_v42, %v3244_v1  ;;  %v1370_v48 = vmul.f32 %v2471_v39, %v1369_v60 }
 0x7d6   : > { %v1364_v55 = vsel %vm1363_vm0, %v3244_v1, %v1362_v47  ;;  %v1371_v56 = vmul.f32 0.5, %v1370_v48  ;;  %v2252_v1 = vld [vmem:[#allocation15 + $0x30] sm:$0xff] }
 0x7d7   : > { %v1367_v57 = vsel %vm1365_vm1, %v1366_v50, %v1364_v55  ;;  %1682 = vmatpush.bf16.msrb.mxu0 %v2252_v1  ;;  %v2249_v50 = vld [vmem:[#allocation15 + $0x18] sm:$0xff]  ;;  %v2255_v55 = vld [vmem:[#allocation15 + $0x48] sm:$0xff] }
 0x7d8   : > { %v1380_v63 = vadd.f32 1e-06, %v1367_v57  ;;  %v1372_v0 = vsub.f32 1.5, %v1371_v56  ;;  %1701 = vmatpush.bf16.msra.mxu1 %v2255_v55  ;;  %v2254_v56 = vld [vmem:[#allocation15 + $0x40] sm:$0xff]  ;;  %v1432_v57 = vld [vmem:[%s3317_s6] sm:$0x3] }
 0x7d9   : > { %v1434_v62 = vperm.slane %v1432_v57, 0 }
 0x7da   : > { %2472 = vrcp.f32 %v1380_v63  ;;  %v1373_v10 = vmul.f32 %v2471_v39, %v1372_v0  ;;  %v1393_v29 = vand.u32 2147483648, %v1380_v63  ;;  %vm1387_vm5 = vweird.f32 %v1380_v63 }
 0x7db   : > { %1683 = vmatpush.bf16.msrb.mxu0 %v2251_v14  ;;  %v1391_v32 = vand.u32 2147483647, %v1380_v63 }
 0x7dc   : > { %v1374_v7 = vmul.f32 %v1373_v10, %v3248_v22  ;;  %v1394_v35 = vor.u32 1.1754944e-38, %v1393_v29  ;;  %1702 = vmatpush.bf16.msra.mxu1 %v2254_v56 }
 0x7dd   : > { %vm1392_vm7 = vcmp.eq.f32.partialorder %v1391_v32, 8.507059e+37 }
 0x7de   : > { %v1376_v12 = vsel %vm1375_vm2, %v3248_v22, %v1374_v7 }
 0x7df   : > { %v1379_v13 = vsel %vm1377_vm3, %v1378_v11, %v1376_v12  ;;  %1684 = vmatpush.bf16.msrb.mxu0 %v2250_v25  ;;  %v2415_v11 = vld [vmem:[#allocation10 + $0x8] ss:$0 sm:$0xff] }
 0x7e0   : > { %v2473_v17 = vpop.eup %2472  ;;  %v1381_v18 = vadd.f32 1e-06, %v1379_v13 }
 0x7e1   : > { %v1383_v20 = vmul.f32 %v2473_v17, %v1380_v63  ;;  %vm1388_vm4 = vweird.f32 %v2473_v17  ;;  %v1435_v63 = vperm.slane %v1432_v57, 1 }
 0x7e2   : > { %2474 = vrcp.f32 %v1381_v18  ;;  %vm1389_vm6 = vmor %vm1387_vm5, %vm1388_vm4  ;;  %v1408_v36 = vand.u32 2147483648, %v1381_v18  ;;  %v1406_v3 = vand.u32 2147483647, %v1381_v18  ;;  %vm1402_vm9 = vweird.f32 %v1381_v18 }
 0x7e3   : > { %v1384_v21 = vsub.f32 1.0, %v1383_v20  ;;  %1685 = vmatpush.bf16.msrb.mxu0 %v2249_v50 }
 0x7e4   : > { %v1409_v41 = vor.u32 1.1754944e-38, %v1408_v36  ;;  %vm1407_vm11 = vcmp.eq.f32.partialorder %v1406_v3, 8.507059e+37 }
 0x7e5   : > { %v1385_v27 = vmul.f32 %v2473_v17, %v1384_v21 }
 0x7e7   : > { %v1386_v28 = vadd.f32 %v2473_v17, %v1385_v27  ;;  %1686 = vmatpush.bf16.msrb.mxu0 %v2248_v52 }
 0x7e8   : > { %v2475_v22 = vpop.eup %2474 }
 0x7e9   : > { %v1398_v24 = vmul.f32 %v2475_v22, %v1381_v18  ;;  %v1390_v34 = vsel %vm1389_vm6, %v2473_v17, %v1386_v28  ;;  %vm1403_vm8 = vweird.f32 %v2475_v22 }
 0x7ea   : > { %v1395_v37 = vsel %vm1392_vm7, %v1394_v35, %v1390_v34  ;;  %vm1404_vm10 = vmor %vm1402_vm9, %vm1403_vm8 }
 0x7eb   : > { %v1399_v2 = vsub.f32 1.0, %v1398_v24  ;;  %v1396_v42 = vmul.f32 %v1395_v37, %v1354_v38  ;;  %1687 = vmatpush.bf16.msrb.mxu0 %v2247_v53 }
 0x7ed   : > { %v1400_v49 = vmul.f32 %v2475_v22, %v1399_v2  ;;  %v1413_v30 = vadd.f32 %v1412_v45, %v1396_v42 }
 0x7ef   : > { %v1401_v39 = vadd.f32 %v2475_v22, %v1400_v49  ;;  %1688 = vmatpush.bf16.msrb.mxu0 %v2246_v46 }
 0x7f1   : > { %v1405_v60 = vsel %vm1404_vm10, %v2475_v22, %v1401_v39 }
 0x7f2   : > { %v1410_v47 = vsel %vm1407_vm11, %v1409_v41, %v1405_v60 }
 0x7f3   : > { %v1411_v48 = vmul.f32 %v1410_v47, %v1355_v40 }
 0x7f5   : > { %v1414_v44 = vadd.f32 %v1412_v45, %v1411_v48 }
 0x7f7   : > { %v1415_v43 = vpack.c.bf16 %v1414_v44, %v1413_v30 }
 0x7f9   : > { %1526 = vmatmul.bf16.vlgmr.msrb.gmra.mxu2 %v1415_v43  ;;  %1540 = vmatmul.bf16.vlgmr.msra.gmra.mxu3 %v1415_v43 }
 0x87c   : > { %v1527_v59 = vpop.f32.mrf.mxu2  ;;  %v1541_v61 = vpop.f32.mrf.mxu3 }
 0x87d   : > { %v1528_v0 = vadd.f32 %v1527_v59, %v1434_v62  ;;  %v1542_v4 = vadd.f32 %v1541_v61, %v1435_v63 }
 0x87f   : > { %v1546_v10 = vmax.f32 %v1528_v0, 0.0  ;;  %v1547_v6 = vmax.f32 %v1542_v4, 0.0 }
 0x884   : > { %v1529_v15 = vpop.f32.mrf.mxu2  ;;  %v1543_v16 = vpop.f32.mrf.mxu3 }
 0x885   : > { %v1530_v23 = vadd.f32 %v1529_v15, %v1434_v62  ;;  %v1544_v5 = vadd.f32 %v1543_v16, %v1435_v63 }
 0x887   : > { %v1548_v1 = vmax.f32 %v1530_v23, 0.0  ;;  %v1549_v7 = vmax.f32 %v1544_v5, 0.0 }
 0x889   : > { %v1550_v8 = vpack.c.bf16 %v1548_v1, %v1546_v10  ;;  %v1551_v9 = vpack.c.bf16 %v1549_v7, %v1547_v6 }
 0x88b   : > { %1689 = vmatmul.bf16.vlgmr.msrb.gmra.mxu0 %v1550_v8  ;;  %1703 = vmatmul.bf16.vlgmr.msra.gmra.mxu1 %v1551_v9 }
 0x908   : > { %v1690_v12 = vpop.f32.mrf.mxu0  ;;  %v1704_v13 = vpop.f32.mrf.mxu1 }
 0x909   : > { %v1691_v14 = vadd.f32 %v2415_v11, %v1690_v12 }
 0x90b   : > { %v1705_v17 = vadd.f32 %v1704_v13, %v1691_v14 }
 0x90d   : > { %v1709_v18 = vadd.f32 %v1705_v17, %v3224_v31 }
 0x90f   : > { %1711 = vst [vmem:[%s483_s27] sm:$0xff] %v1709_v18 }
 0x910   : > { %v1692_v19 = vpop.f32.mrf.mxu0  ;;  %v1706_v21 = vpop.f32.mrf.mxu1 }
 0x911   : > { %v1693_v20 = vadd.f32 %v2415_v11, %v1692_v19 }
 0x913   : > { %v1707_v25 = vadd.f32 %v1706_v21, %v1693_v20 }
 0x915   : > { %v1710_v26 = vadd.f32 %v1707_v25, %v3228_v51 }
 0x917   : > { %1712 = vst [vmem:[%s483_s27 + $0x8] sm:$0xff] %v1710_v26 }
 0x918   : > { %2715 = shalt.err (!%p2712_p12)
}
 0x919   : > { %s2800_s20 = smov 128   ;;  %s2801_s13 = smov 8  }
 0x91a   : > { %2295 = dma.vmem_to_hbm [thread:$0]  (%p2936_p7), %s1729_s14, 256, %s1731_s1, %s1714_s15, %s2800_s20, %s2800_s20, %s2801_s13  }
 0x91b PF: > { %s3368_s3 = sld [smem:[#allocation22_spill]]  ;;  %p3370_p13 = scmp.ge.s32.totalorder %s2782_s10, 2 }
 0x91d   : > { %p2321_p0 = pnand %p3370_p13, %p2892_p6 }
 0x91f   : > { %p2322_p3 = pneg %p2321_p0 }
 0x921   : > { %s1745_s5 = sand.u32 1, %s3368_s3  }
 0x922   : > { %s1746_s26 = scalar_lea.sflag [#allocation6], %s1745_s5 }
 0x923   : > { %2757 = dma.done.wait (%p2322_p3), %s1746_s26, 256  }
 0x924   : > { %2759 = vsyncadd (%p2322_p3), %s1746_s26, 4294967040  ;;  %s29_s10 = sadd.s32 1, %s2782_s10   ;;  %s3371_s16 = sld [smem:[#allocation27_spill]] }
 0x925   : > { %p26_p5 = scmp.ge.s32.totalorder %s29_s10, 4   ;;  %s3372_s25 = sld [smem:[#allocation25_spill]] }
 0x926   : > { %s3373_s27 = smov %s2766_s28  ;;  %s3374_s28 = smov %s2770_s29 }
 0x927   : > { %s3376_s30 = smov %s2778_s9  ;;  %28 = sbr.rel (!%p26_p5) target bundleno = 16 (0x10), region = 141 }
 0x92a   : > { %s3375_s29 = smov %s3371_s16 }
 0x92b   : > { %s3377_s9 = smov %s3372_s25 }
 0x92c   :  { %1752 = vsyncpa [#allocation5], 1 }
 0x92d   :  { %1754 = vsyncpa [#allocation5 + $0x1], 1 }
 0x92e   :  { %1755 = vsyncpa [#allocation8], 1 }
 0x92f   :  { %1757 = vsyncpa [#allocation8 + $0x1], 1 }
 0x930   :  { %1758 = vsyncpa [#allocation11], 1 }
 0x931   :  { %1759 = vsyncpa [#allocation14], 1 }
 0x932   :  { %1760 = vsyncpa [#allocation6], 1 }
 0x933   :  { %1762 = vsyncpa [#allocation6 + $0x1], 1 }

</bundles_post_ra>
